<compile_context>
chip_gen: v7x
topology: tpu7x:2x2x1
jax: 0.10.0
libtpu: 0.0.40
codegen_flags: <defaults>
</compile_context>

<pallas_src>
import jax
import jax.numpy as jnp
from jax import lax
from jax.experimental import pallas as pl
from jax.experimental.pallas import tpu as pltpu


def attention_kernel(x_ref, xj_ref, wq_ref, bq_ref, wk_ref, bk_ref,
                     wv_ref, bv_ref, gamma_ref, o_ref, q_scr, acc_ref):
    # x_ref : (in_c, N)      full spatial extent for the current batch element
    # xj_ref: (in_c, TJ)     current key/value tile of the same batch element
    j = pl.program_id(1)

    # Per-batch init: query projection over the full spatial extent (reused
    # across all key tiles) and zeroed output accumulator.
    @pl.when(j == 0)
    def _init():
        x_bf = x_ref[...].astype(jnp.bfloat16)
        q = jnp.dot(wq_ref[...], x_bf,
                    preferred_element_type=jnp.float32) + bq_ref[...]
        q_scr[...] = q.astype(jnp.bfloat16)          # (attn_c_p, N)
        acc_ref[...] = jnp.zeros_like(acc_ref)

    xj = xj_ref[...].astype(jnp.bfloat16)            # (in_c, TJ)
    k = (jnp.dot(wk_ref[...], xj, preferred_element_type=jnp.float32)
         + bk_ref[...]).astype(jnp.bfloat16)         # (attn_c_p, TJ)
    v = (jnp.dot(wv_ref[...], xj, preferred_element_type=jnp.float32)
         + bv_ref[...]).astype(jnp.bfloat16)         # (in_c, TJ)

    # energy_T[jj, i] = sum_c k[c, jj] * q[c, i]   -> (TJ, N)
    energy_t = lax.dot_general(k, q_scr[...], (((0,), (0,)), ((), ())),
                               preferred_element_type=jnp.float32)

    # torch nn.Softmax(dim=1) on (bs, N_i, N_j) == normalize over i, which is
    # the LAST (lane) axis of energy_T -> fully local per j-row.  f32 math.
    m = jnp.max(energy_t, axis=-1, keepdims=True)
    e = jnp.exp(energy_t - m)
    inv = pl.reciprocal(jnp.sum(e, axis=-1, keepdims=True), approx=True)
    attn_t = (e * inv).astype(jnp.bfloat16)          # (TJ, N)

    # out[c, i] += sum_{jj in tile} v[c, jj] * attn_T[jj, i]   (canonical MXU)
    acc_ref[...] += jnp.dot(v, attn_t, preferred_element_type=jnp.float32)

    @pl.when(j == pl.num_programs(1) - 1)
    def _finalize():
        o_ref[...] = (gamma_ref[0] * acc_ref[...]
                      + x_ref[...].astype(jnp.float32)).astype(o_ref.dtype)


def _choose_key_tile(n, max_bytes=4 << 20):
    """Largest key-axis tile (multiple of 128 dividing N) keeping the (TJ, N)
    f32 energy tile around/below `max_bytes`; full N when it already fits."""
    if n * n * 4 <= max_bytes or n % 128 != 0:
        return n
    tj = max(128, (max_bytes // (n * 4)) // 128 * 128)
    while n % tj:
        tj -= 128
    return max(tj, 128)


def attention_mech(x4, wq, bq, wk, bk, wv, bv, gamma, *, key_tile=None):
    """x4: (bs, in_c, w, h); wq/wk: (attn_c, in_c); wv: (in_c, in_c);
    bq/bk: (attn_c,); bv: (in_c,); gamma: (1,)."""
    bs, in_c, w, h = x4.shape
    N = w * h
    x = x4.reshape(bs, in_c, N)
    attn_c = wq.shape[0]

    # Zero-pad attn_c up to a multiple of 16 (bf16 sublane packing); padded
    # rows of q/k are exactly zero so the energy matmul is unchanged.
    attn_c_p = max(16, -(-attn_c // 16) * 16)
    pad = attn_c_p - attn_c
    wq_p = jnp.pad(wq, ((0, pad), (0, 0))).astype(jnp.bfloat16)
    wk_p = jnp.pad(wk, ((0, pad), (0, 0))).astype(jnp.bfloat16)
    bq_p = jnp.pad(bq, ((0, pad),)).reshape(attn_c_p, 1).astype(jnp.float32)
    bk_p = jnp.pad(bk, ((0, pad),)).reshape(attn_c_p, 1).astype(jnp.float32)
    wv_b = wv.astype(jnp.bfloat16)
    bv_2 = bv.reshape(in_c, 1).astype(jnp.float32)
    gamma_f = gamma.astype(jnp.float32)

    tj = _choose_key_tile(N) if key_tile is None else key_tile
    nj = N // tj

    out = pl.pallas_call(
        attention_kernel,
        out_shape=jax.ShapeDtypeStruct((bs, in_c, N), x.dtype),
        grid=(bs, nj),
        in_specs=[
            pl.BlockSpec((None, in_c, N), lambda b, j: (b, 0, 0)),    # x (full)
            pl.BlockSpec((None, in_c, tj), lambda b, j: (b, 0, j)),   # x (j tile)
            pl.BlockSpec((attn_c_p, in_c), lambda b, j: (0, 0)),      # Wq
            pl.BlockSpec((attn_c_p, 1), lambda b, j: (0, 0)),         # bq
            pl.BlockSpec((attn_c_p, in_c), lambda b, j: (0, 0)),      # Wk
            pl.BlockSpec((attn_c_p, 1), lambda b, j: (0, 0)),         # bk
            pl.BlockSpec((in_c, in_c), lambda b, j: (0, 0)),          # Wv
            pl.BlockSpec((in_c, 1), lambda b, j: (0, 0)),             # bv
            pl.BlockSpec(memory_space=pltpu.MemorySpace.SMEM),        # gamma
        ],
        out_specs=pl.BlockSpec((None, in_c, N), lambda b, j: (b, 0, 0)),
        scratch_shapes=[
            pltpu.VMEM((attn_c_p, N), jnp.bfloat16),   # q (reused across j)
            pltpu.VMEM((in_c, N), jnp.float32),        # output accumulator
        ],
        compiler_params=pltpu.CompilerParams(
            dimension_semantics=("parallel", "arbitrary"),
            vmem_limit_bytes=48 * 1024 * 1024,
        ),
    )(x, x, wq_p, bq_p, wk_p, bk_p, wv_b, bv_2, gamma_f)

    return out.reshape(bs, in_c, w, h)


# ---------- plain-JAX glue: deterministic parameter setup -------------------
# TODO(synk): spectral_norm's power iteration is a parametrization applied at
# module setup, so it is done once in plain JAX here rather than in the kernel.

def spectral_normalize(w, n_iters=30):
    v = jnp.ones((w.shape[1],), w.dtype)
    for _ in range(n_iters):
        u = w @ v
        u = u / (jnp.linalg.norm(u) + 1e-12)
        v = w.T @ u
        v = v / (jnp.linalg.norm(v) + 1e-12)
    sigma = u @ (w @ v)
    return w / sigma


def conv1x1_init(key, out_c, in_c):
    # PyTorch Conv2d default init: uniform(-1/sqrt(fan_in), 1/sqrt(fan_in)).
    bound = 1.0 / jnp.sqrt(jnp.float32(in_c))
    kw, kb = jax.random.split(key)
    w = jax.random.uniform(kw, (out_c, in_c), jnp.float32, -bound, bound)
    b = jax.random.uniform(kb, (out_c,), jnp.float32, -bound, bound)
    return spectral_normalize(w), b   # SpecNorm applies to the weight only


def reference(x4, wq, bq, wk, bk, wv, bv, gamma):
    bs, in_c, w, h = x4.shape
    N = w * h
    x = x4.reshape(bs, in_c, N)
    q = jnp.einsum('oc,bcn->bon', wq, x) + bq[None, :, None]
    k = jnp.einsum('oc,bcn->bon', wk, x) + bk[None, :, None]
    v = jnp.einsum('oc,bcn->bon', wv, x) + bv[None, :, None]
    energy = jnp.einsum('bci,bcj->bij', q, k)
    attn = jax.nn.softmax(energy, axis=1)
    out = jnp.einsum('bcj,bij->bci', v, attn)
    return (gamma[0] * out + x).reshape(bs, in_c, w, h)


if __name__ == "__main__":
    key = jax.random.PRNGKey(0)
    bs, in_c, w, h = 2, 32, 16, 16
    attn_c = in_c // 8

    k_q, k_k, k_v, k_x = jax.random.split(key, 4)
    wq, bq = conv1x1_init(k_q, attn_c, in_c)
    wk, bk = conv1x1_init(k_k, attn_c, in_c)
    wv, bv = conv1x1_init(k_v, in_c, in_c)
    # Module initializes gamma to zeros; use a nonzero value so the attention
    # path actually contributes in this synthetic test.
    gamma = jnp.array([0.5], jnp.float32)

    x = jax.random.normal(k_x, (bs, in_c, w, h), jnp.float32)

    out = attention_mech(x, wq, bq, wk, bk, wv, bv, gamma)
    out = jax.block_until_ready(out)

    ref = reference(x, wq, bq, wk, bk, wv, bv, gamma)
    assert out.shape == (bs, in_c, w, h)
    # bf16 MXU operands + approx reciprocal -> looser tolerance than pure f32.
    assert jnp.allclose(out, ref, atol=3e-2, rtol=3e-2), "mismatch vs reference"
    print("KERNEL_OK")
</pallas_src>

<mosaic_0001>
module attributes {stable_mosaic.version = 11 : i64} {
  func.func @attention_kernel(%arg0: i32, %arg1: i32, %arg2: memref<1x32x256xf32, #tpu.memory_space<vmem>>, %arg3: memref<1x32x256xf32, #tpu.memory_space<vmem>>, %arg4: memref<16x32xbf16, #tpu.memory_space<vmem>>, %arg5: memref<16x1xf32, #tpu.memory_space<vmem>>, %arg6: memref<16x32xbf16, #tpu.memory_space<vmem>>, %arg7: memref<16x1xf32, #tpu.memory_space<vmem>>, %arg8: memref<32x32xbf16, #tpu.memory_space<vmem>>, %arg9: memref<32x1xf32, #tpu.memory_space<vmem>>, %arg10: memref<1xf32, #tpu.memory_space<smem>>, %arg11: memref<1x32x256xf32, #tpu.memory_space<vmem>>, %arg12: memref<16x256xbf16, #tpu.memory_space<vmem>>, %arg13: memref<32x256xf32, #tpu.memory_space<vmem>>) attributes {dimension_semantics = [#tpu.dimension_semantics<parallel>, #tpu.dimension_semantics<arbitrary>], iteration_bounds = array<i64: 2, 1>, scalar_prefetch = 0 : i64, scratch_operands = 2 : i64, tpu.core_type = #tpu.core_type<tc>, window_params = [{transform_indices = @transform_0, window_bounds = array<i64: 1, 32, 256>}, {transform_indices = @transform_1, window_bounds = array<i64: 1, 32, 256>}, {pipeline_mode = #tpu.pipeline_mode<synchronous>, transform_indices = @transform_2, window_bounds = array<i64: 16, 32>}, {pipeline_mode = #tpu.pipeline_mode<synchronous>, transform_indices = @transform_3, window_bounds = array<i64: 16, 1>}, {pipeline_mode = #tpu.pipeline_mode<synchronous>, transform_indices = @transform_4, window_bounds = array<i64: 16, 32>}, {pipeline_mode = #tpu.pipeline_mode<synchronous>, transform_indices = @transform_5, window_bounds = array<i64: 16, 1>}, {pipeline_mode = #tpu.pipeline_mode<synchronous>, transform_indices = @transform_6, window_bounds = array<i64: 32, 32>}, {pipeline_mode = #tpu.pipeline_mode<synchronous>, transform_indices = @transform_7, window_bounds = array<i64: 32, 1>}, {transform_indices = @transform_8, window_bounds = array<i64: 1>}, {transform_indices = @transform_9, window_bounds = array<i64: 1, 32, 256>}]} {
    %c0_i32 = arith.constant 0 : i32
    %0 = arith.cmpi eq, %arg1, %c0_i32 : i32
    %1 = arith.extui %0 : i1 to i32
    %c0_i32_0 = arith.constant 0 : i32
    %2 = arith.cmpi ne, %1, %c0_i32_0 : i32
    scf.if %2 {
      %c0_24 = arith.constant 0 : index
      %c0_25 = arith.constant 0 : index
      %c0_26 = arith.constant 0 : index
      %38 = vector.load %arg2[%c0_24, %c0_25, %c0_26] : memref<1x32x256xf32, #tpu.memory_space<vmem>>, vector<1x32x256xf32>
      %39 = vector.shape_cast %38 : vector<1x32x256xf32> to vector<32x256xf32>
      %40 = arith.truncf %39 : vector<32x256xf32> to vector<32x256xbf16>
      %c0_27 = arith.constant 0 : index
      %c0_28 = arith.constant 0 : index
      %41 = vector.load %arg4[%c0_27, %c0_28] : memref<16x32xbf16, #tpu.memory_space<vmem>>, vector<16x32xbf16>
      %cst_29 = arith.constant dense<0.000000e+00> : vector<16x256xf32>
      %42 = tpu.matmul %41, %40, %cst_29 {dimension_numbers = #tpu.dot_dimension_numbers<[1], [0], [0], [1], [0, 0, 1, 1], [], []>} : vector<16x32xbf16>, vector<32x256xbf16>, vector<16x256xf32> -> vector<16x256xf32>
      %c0_30 = arith.constant 0 : index
      %c0_31 = arith.constant 0 : index
      %43 = vector.load %arg5[%c0_30, %c0_31] : memref<16x1xf32, #tpu.memory_space<vmem>>, vector<16x1xf32>
      %44 = vector.broadcast %43 : vector<16x1xf32> to vector<16x256xf32>
      %45 = arith.addf %42, %44 : vector<16x256xf32>
      %46 = arith.truncf %45 : vector<16x256xf32> to vector<16x256xbf16>
      %c0_32 = arith.constant 0 : index
      %c0_33 = arith.constant 0 : index
      %47 = vector.load %arg12[%c0_32, %c0_33] : memref<16x256xbf16, #tpu.memory_space<vmem>>, vector<16x256xbf16>
      tpu.vector_store %arg12[%c0_32, %c0_33], %46 {strides = array<i32>} : memref<16x256xbf16, #tpu.memory_space<vmem>>, vector<16x256xbf16>,
      %cst_34 = arith.constant 0.000000e+00 : f32
      %48 = vector.broadcast %cst_34 : f32 to vector<32x256xf32>
      %c0_35 = arith.constant 0 : index
      %c0_36 = arith.constant 0 : index
      %49 = vector.load %arg13[%c0_35, %c0_36] : memref<32x256xf32, #tpu.memory_space<vmem>>, vector<32x256xf32>
      tpu.vector_store %arg13[%c0_35, %c0_36], %48 {strides = array<i32>} : memref<32x256xf32, #tpu.memory_space<vmem>>, vector<32x256xf32>,
    } else {
    }
    %c0 = arith.constant 0 : index
    %c0_1 = arith.constant 0 : index
    %c0_2 = arith.constant 0 : index
    %3 = vector.load %arg3[%c0, %c0_1, %c0_2] : memref<1x32x256xf32, #tpu.memory_space<vmem>>, vector<1x32x256xf32>
    %4 = vector.shape_cast %3 : vector<1x32x256xf32> to vector<32x256xf32>
    %5 = arith.truncf %4 : vector<32x256xf32> to vector<32x256xbf16>
    %c0_3 = arith.constant 0 : index
    %c0_4 = arith.constant 0 : index
    %6 = vector.load %arg6[%c0_3, %c0_4] : memref<16x32xbf16, #tpu.memory_space<vmem>>, vector<16x32xbf16>
    %cst = arith.constant dense<0.000000e+00> : vector<16x256xf32>
    %7 = tpu.matmul %6, %5, %cst {dimension_numbers = #tpu.dot_dimension_numbers<[1], [0], [0], [1], [0, 0, 1, 1], [], []>} : vector<16x32xbf16>, vector<32x256xbf16>, vector<16x256xf32> -> vector<16x256xf32>
    %c0_5 = arith.constant 0 : index
    %c0_6 = arith.constant 0 : index
    %8 = vector.load %arg7[%c0_5, %c0_6] : memref<16x1xf32, #tpu.memory_space<vmem>>, vector<16x1xf32>
    %9 = vector.broadcast %8 : vector<16x1xf32> to vector<16x256xf32>
    %10 = arith.addf %7, %9 : vector<16x256xf32>
    %11 = arith.truncf %10 : vector<16x256xf32> to vector<16x256xbf16>
    %c0_7 = arith.constant 0 : index
    %c0_8 = arith.constant 0 : index
    %12 = vector.load %arg8[%c0_7, %c0_8] : memref<32x32xbf16, #tpu.memory_space<vmem>>, vector<32x32xbf16>
    %cst_9 = arith.constant dense<0.000000e+00> : vector<32x256xf32>
    %13 = tpu.matmul %12, %5, %cst_9 {dimension_numbers = #tpu.dot_dimension_numbers<[1], [0], [0], [1], [0, 0, 1, 1], [], []>} : vector<32x32xbf16>, vector<32x256xbf16>, vector<32x256xf32> -> vector<32x256xf32>
    %c0_10 = arith.constant 0 : index
    %c0_11 = arith.constant 0 : index
    %14 = vector.load %arg9[%c0_10, %c0_11] : memref<32x1xf32, #tpu.memory_space<vmem>>, vector<32x1xf32>
    %15 = vector.broadcast %14 : vector<32x1xf32> to vector<32x256xf32>
    %16 = arith.addf %13, %15 : vector<32x256xf32>
    %17 = arith.truncf %16 : vector<32x256xf32> to vector<32x256xbf16>
    %c0_12 = arith.constant 0 : index
    %c0_13 = arith.constant 0 : index
    %18 = vector.load %arg12[%c0_12, %c0_13] : memref<16x256xbf16, #tpu.memory_space<vmem>>, vector<16x256xbf16>
    %cst_14 = arith.constant dense<0.000000e+00> : vector<256x256xf32>
    %19 = tpu.matmul %11, %18, %cst_14 {dimension_numbers = #tpu.dot_dimension_numbers<[0], [0], [1], [1], [0, 1, 1, 1], [], []>} : vector<16x256xbf16>, vector<16x256xbf16>, vector<256x256xf32> -> vector<256x256xf32>
    %cst_15 = arith.constant dense<0xFF800000> : vector<256xf32>
    %20 = vector.multi_reduction <maximumf>, %19, %cst_15 [1] : vector<256x256xf32> to vector<256xf32>
    %21 = vector.shape_cast %20 : vector<256xf32> to vector<256x1xf32>
    %22 = vector.broadcast %21 : vector<256x1xf32> to vector<256x256xf32>
    %23 = arith.subf %19, %22 : vector<256x256xf32>
    %24 = math.exp %23 : vector<256x256xf32>
    %cst_16 = arith.constant dense<0.000000e+00> : vector<256xf32>
    %25 = vector.multi_reduction <add>, %24, %cst_16 [1] : vector<256x256xf32> to vector<256xf32>
    %26 = vector.shape_cast %25 : vector<256xf32> to vector<256x1xf32>
    %27 = tpu.reciprocal %26 {approx = true} : vector<256x1xf32> -> vector<256x1xf32>
    %28 = vector.broadcast %27 : vector<256x1xf32> to vector<256x256xf32>
    %29 = arith.mulf %24, %28 : vector<256x256xf32>
    %30 = arith.truncf %29 : vector<256x256xf32> to vector<256x256xbf16>
    %c0_17 = arith.constant 0 : index
    %c0_18 = arith.constant 0 : index
    %31 = vector.load %arg13[%c0_17, %c0_18] : memref<32x256xf32, #tpu.memory_space<vmem>>, vector<32x256xf32>
    %cst_19 = arith.constant dense<0.000000e+00> : vector<32x256xf32>
    %32 = tpu.matmul %17, %30, %cst_19 {dimension_numbers = #tpu.dot_dimension_numbers<[1], [0], [0], [1], [0, 0, 1, 1], [], []>} : vector<32x256xbf16>, vector<256x256xbf16>, vector<32x256xf32> -> vector<32x256xf32>
    %33 = arith.addf %31, %32 : vector<32x256xf32>
    %c0_20 = arith.constant 0 : index
    %c0_21 = arith.constant 0 : index
    %34 = vector.load %arg13[%c0_20, %c0_21] : memref<32x256xf32, #tpu.memory_space<vmem>>, vector<32x256xf32>
    tpu.vector_store %arg13[%c0_20, %c0_21], %33 {strides = array<i32>} : memref<32x256xf32, #tpu.memory_space<vmem>>, vector<32x256xf32>,
    %c0_i32_22 = arith.constant 0 : i32
    %35 = arith.cmpi eq, %arg1, %c0_i32_22 : i32
    %36 = arith.extui %35 : i1 to i32
    %c0_i32_23 = arith.constant 0 : i32
    %37 = arith.cmpi ne, %36, %c0_i32_23 : i32
    scf.if %37 {
      %c0_24 = arith.constant 0 : index
      %38 = memref.load %arg10[%c0_24] : memref<1xf32, #tpu.memory_space<smem>>
      %c0_25 = arith.constant 0 : index
      %c0_26 = arith.constant 0 : index
      %39 = vector.load %arg13[%c0_25, %c0_26] : memref<32x256xf32, #tpu.memory_space<vmem>>, vector<32x256xf32>
      %40 = vector.broadcast %38 : f32 to vector<32x256xf32>
      %41 = arith.mulf %40, %39 : vector<32x256xf32>
      %c0_27 = arith.constant 0 : index
      %c0_28 = arith.constant 0 : index
      %c0_29 = arith.constant 0 : index
      %42 = vector.load %arg2[%c0_27, %c0_28, %c0_29] : memref<1x32x256xf32, #tpu.memory_space<vmem>>, vector<1x32x256xf32>
      %43 = vector.shape_cast %42 : vector<1x32x256xf32> to vector<32x256xf32>
      %44 = arith.addf %41, %43 : vector<32x256xf32>
      %c0_30 = arith.constant 0 : index
      %c0_31 = arith.constant 0 : index
      %c0_32 = arith.constant 0 : index
      %45 = vector.load %arg11[%c0_30, %c0_31, %c0_32] : memref<1x32x256xf32, #tpu.memory_space<vmem>>, vector<1x32x256xf32>
      %46 = vector.shape_cast %45 : vector<1x32x256xf32> to vector<32x256xf32>
      %47 = vector.shape_cast %44 : vector<32x256xf32> to vector<1x32x256xf32>
      tpu.vector_store %arg11[%c0_30, %c0_31, %c0_32], %47 {strides = array<i32>} : memref<1x32x256xf32, #tpu.memory_space<vmem>>, vector<1x32x256xf32>,
    } else {
    }
    return
  }
  func.func @transform_0(%arg0: i32, %arg1: i32) -> (i32, i32, i32) {
    %c0_i32 = arith.constant 0 : i32
    %c0_i32_0 = arith.constant 0 : i32
    %c0_i32_1 = arith.constant 0 : i32
    return %arg0, %c0_i32, %c0_i32_0 : i32, i32, i32
  }
  func.func @transform_1(%arg0: i32, %arg1: i32) -> (i32, i32, i32) {
    %c0_i32 = arith.constant 0 : i32
    %c0_i32_0 = arith.constant 0 : i32
    return %arg0, %c0_i32, %arg1 : i32, i32, i32
  }
  func.func @transform_2(%arg0: i32, %arg1: i32) -> (i32, i32) {
    %c0_i32 = arith.constant 0 : i32
    %c0_i32_0 = arith.constant 0 : i32
    %c0_i32_1 = arith.constant 0 : i32
    return %c0_i32, %c0_i32_0 : i32, i32
  }
  func.func @transform_3(%arg0: i32, %arg1: i32) -> (i32, i32) {
    %c0_i32 = arith.constant 0 : i32
    %c0_i32_0 = arith.constant 0 : i32
    %c0_i32_1 = arith.constant 0 : i32
    return %c0_i32, %c0_i32_0 : i32, i32
  }
  func.func @transform_4(%arg0: i32, %arg1: i32) -> (i32, i32) {
    %c0_i32 = arith.constant 0 : i32
    %c0_i32_0 = arith.constant 0 : i32
    %c0_i32_1 = arith.constant 0 : i32
    return %c0_i32, %c0_i32_0 : i32, i32
  }
  func.func @transform_5(%arg0: i32, %arg1: i32) -> (i32, i32) {
    %c0_i32 = arith.constant 0 : i32
    %c0_i32_0 = arith.constant 0 : i32
    %c0_i32_1 = arith.constant 0 : i32
    return %c0_i32, %c0_i32_0 : i32, i32
  }
  func.func @transform_6(%arg0: i32, %arg1: i32) -> (i32, i32) {
    %c0_i32 = arith.constant 0 : i32
    %c0_i32_0 = arith.constant 0 : i32
    %c0_i32_1 = arith.constant 0 : i32
    return %c0_i32, %c0_i32_0 : i32, i32
  }
  func.func @transform_7(%arg0: i32, %arg1: i32) -> (i32, i32) {
    %c0_i32 = arith.constant 0 : i32
    %c0_i32_0 = arith.constant 0 : i32
    %c0_i32_1 = arith.constant 0 : i32
    return %c0_i32, %c0_i32_0 : i32, i32
  }
  func.func @transform_8(%arg0: i32, %arg1: i32) -> i32 {
    %c0_i32 = arith.constant 0 : i32
    %c0_i32_0 = arith.constant 0 : i32
    return %c0_i32 : i32
  }
  func.func @transform_9(%arg0: i32, %arg1: i32) -> (i32, i32, i32) {
    %c0_i32 = arith.constant 0 : i32
    %c0_i32_0 = arith.constant 0 : i32
    %c0_i32_1 = arith.constant 0 : i32
    return %arg0, %c0_i32, %c0_i32_0 : i32, i32, i32
  }
}

</mosaic_0001>

<bundles_post_ra>
// kernel: tpu_custom_call.1
= control target key start
LH: loop header
LB: loop body
LE: loop exit
PB: predicated region body
PF: predicated region fallthrough
CT: control target
= control target key end

     0   :  { %s3130_s0 = inlined_call_operand.hbm [shape: f32[2,32,256], index: 0, kind: input, shape index: {}]   ;;  %s3131_s1 = inlined_call_operand.hbm [shape: f32[2,32,256], index: 1, kind: input, shape index: {}]   ;;  %s3132_s2 = inlined_call_operand.vmem [shape: bf16[16,32], index: 2, kind: input, shape index: {}]   ;;  %s3133_s3 = inlined_call_operand.vmem [shape: f32[16,1], index: 3, kind: input, shape index: {}]   ;;  %s3134_s4 = inlined_call_operand.vmem [shape: bf16[16,32], index: 4, kind: input, shape index: {}]   ;;  %s3135_s5 = inlined_call_operand.vmem [shape: f32[16,1], index: 5, kind: input, shape index: {}]   ;;  %s3136_s6 = inlined_call_operand.vmem [shape: bf16[32,32], index: 6, kind: input, shape index: {}]   ;;  %s3137_s7 = inlined_call_operand.vmem [shape: f32[32,1], index: 7, kind: input, shape index: {}]   ;;  %s3138_s8 = inlined_call_operand.<no memory space> [shape: f32[1], index: 8, kind: input, shape index: {}]   ;;  %s3139_s9 = inlined_call_operand.hbm [shape: f32[2,32,256], index: 9, kind: output, shape index: {}]  }
   0x1   :  { %3176 = sst [smem:[#allocation40_spill]] %s3130_s0 }
   0x2   :  { %14 = sst [smem:[#allocation4]] %s3138_s8 }
   0x3   :  { %15 = vsyncpa [#allocation6], 0 }
   0x4   :  { %17 = vsyncpa [#allocation6 + $0x1], 0 }
   0x5   :  { %18 = vsyncpa [#allocation9], 0 }
   0x6   :  { %20 = vsyncpa [#allocation9 + $0x1], 0 }
   0x7   :  { %21 = vsyncpa [#allocation7], 0 }
   0x8   :  { %23 = vsyncpa [#allocation7 + $0x1], 0  ;;  %s2241_s11 = smov 0   ;;  %s2243_s12 = smov 0  }
   0x9   :  { %s2245_s13 = smov 0   ;;  %s2247_s14 = smov 0  }
   0xa   :  { %s2249_s15 = smov 0   ;;  %s2251_s16 = smov 0  }
   0xb LB: > { %3177 = sst [smem:[#allocation14_spill]] %s2166_s13  ;;  %s1716_s8 = sadd.s32 4294967295, %s2178_s16   ;;  %s2178_s16 = sphi %s2251_s16, %s29_s16   ;;  %s2174_s15 = sphi %s2249_s15, %s3280_s15   ;;  %s2170_s14 = sphi %s2247_s14, %s3279_s14   ;;  %s2166_s13 = sphi %s2245_s13, %s3275_s13   ;;  %s2162_s12 = sphi %s2243_s12, %s3278_s12   ;;  %s2158_s11 = sphi %s2241_s11, %s3277_s11  }
   0xc   : > { %s1717_s17 = sadd.s32 4294967294, %s2178_s16   ;;  %s41_s18 = sadd.s32 1, %s2174_s15 }
   0xd   : > { %s48_s19 = sadd.s32 1, %s2166_s13  ;;  %p43_p0 = scmp.ge.s32.totalorder %s41_s18, 2 }
   0xe   : > { %p55_p1 = scmp.ne.s32.totalorder %s2166_s13, %s2162_s12  ;;  %p56_p2 = scmp.eq.s32.totalorder %s2178_s16, 0 }
   0xf   : > { %p61_p3 = scmp.ne.s32.totalorder %s2162_s12, %s2158_s11  ;;  %s3282_s18 = smov (%p43_p0, %s41_s18), 0 }
  0x10   : > { %3178 = sst [smem:[#allocation15_spill]] %s3282_s18  ;;  %p2282_p4 = por %p56_p2, %p55_p1 }
  0x11   : > { %p62_p5 = scmp.eq.s32.totalorder %s1716_s8, 0  ;;  %s45_s21 = ssub.s32 %s2174_s15, %s3282_s18 }
  0x12   : > { %p260_p6 = scmp.eq.s32.totalorder %s1716_s8, 1  ;;  %p46_p7 = scmp.eq.s32.totalorder %s45_s21, 0 }
  0x13   : > { %p2288_p8 = por %p62_p5, %p61_p3  ;;  %p266_p10 = scmp.eq.s32.totalorder %s1717_s17, 1 }
  0x14   : > { %p2292_p9 = por %p260_p6, %p55_p1  ;;  %p1779_p13 = scmp.lt.s32.totalorder %s2178_s16, 2 }
  0x15   : > { %s3180_s22 = scalar_select %p2288_p8, 1, 0 }
  0x16   : > { %s3181_s23 = scalar_select %p2292_p9, 1, 0 }
  0x17   : > { %s2297_s24 = scalar_select %p46_p7, %s2166_s13, %s48_s19  }
  0x18   : > { %p2299_p11 = por %p266_p10, %p61_p3  ;;  %s2306_s26 = sand.u32 1, %s2166_s13  }
  0x19   : > { %3182 = sst [smem:[#allocation16_spill]] %s2297_s24  ;;  %s3140_s27 = sshll.u32 %s2306_s26, 6 }
  0x1a   : > { %s3183_s25 = scalar_select %p2299_p11, 1, 0 }
  0x1b   : > { %s3141_s28 = sshll.u32 %s2174_s15, 10  ;;  %s3184_s0 = sld [smem:[#allocation40_spill]] }
  0x1c   : > { %s311_s8 = scalar_lea.vmem [#allocation5], %s3140_s27  ;;  %p2323_p0 = pnand %p1779_p13, %p2282_p4 }
  0x1d   : > { %s318_s17 = sshll.u32 %s311_s8, 4  ;;  %s2319_s17 = int_to_ptr.vmem [resolvable:$true] %s318_s17 }
  0x1e   : > { %p2034_p3 = pneg %p2323_p0 }
  0x21   : > { %s2315_s10 = scalar_lea.hbm %s3184_s0, %s3141_s28  ;;  %s2037_s20 = scalar_lea.hbm %s3184_s0, 2048 }
  0x22   : > { %s2032_s29 = scalar_lea.hbm %s2315_s10, 1024  ;;  %p2038_p4 = scmp.lt.u32.totalorder %s2315_s10, %s3184_s0 }
  0x23   : > { %p2033_p2 = scmp.ne.s32.totalorder %s2315_s10, %s2032_s29  ;;  %p2039_p7 = scmp.lt.u32.totalorder %s2037_s20, %s2032_s29 }
  0x24   : > { %p2041_p13 = scmp.lt.u32.totalorder %s2032_s29, %s2315_s10 }
  0x25   : > { %p2035_p5 = pnand %p2034_p3, %p2033_p2  ;;  %p2040_p10 = por %p2039_p7, %p2038_p4 }
  0x27   : > { %p2036_p6 = pneg %p2035_p5  ;;  %p2042_p12 = por %p2041_p13, %p2040_p10 }
  0x29   : > { %p2043_p1 = pnand %p2042_p12, %p2036_p6 }
  0x2b   : > { %2046 = shalt.err (!%p2043_p1)
}
  0x2c   : > { %s2047_s21 = scalar_lea.vmem %s2319_s17, 1024  ;;  %s2180_s30 = smov [#allocation5]  }
  0x2d   : > { %p2048_p2 = scmp.ne.s32.totalorder %s2319_s17, %s2047_s21  ;;  %s2052_s8 = sshll.u32 %s2180_s30, 4  ;;  %s2053_s8 = int_to_ptr.vmem [resolvable:$false] %s2052_s8 }
  0x2e   : > { %s2054_s27 = scalar_lea.vmem %s2053_s8, 2048  ;;  %p2055_p9 = scmp.lt.s32.totalorder %s2319_s17, %s2053_s8 }
  0x2f   : > { %p2050_p5 = pnand %p2048_p2, %p2034_p3  ;;  %p2056_p4 = scmp.lt.s32.totalorder %s2054_s27, %s2047_s21 }
  0x31   : > { %p2051_p11 = pneg %p2050_p5  ;;  %p2057_p7 = por %p2056_p4, %p2055_p9 }
  0x33   : > { %p2058_p10 = pnand %p2057_p7, %p2051_p11 }
  0x35   : > { %2061 = shalt.err (!%p2058_p10)
}
  0x36   : > { %s3145_s28 = smov 256   ;;  %s2182_s29 = smov 16  }
  0x37   : > { %s3186_s21 = scalar_lea.sflag [#allocation6], %s2306_s26  ;;  %p349_p9 = scmp.lt.s32.totalorder %s2178_s16, 3 }
  0x38   : > { %1771 = dma.hbm_to_vmem [thread:$0]  (!%p2323_p0), %s2315_s10, 1024, %s2319_s17, %s3186_s21, %s3145_s28, %s3145_s28, %s2182_s29  }
  0x39   : > { %s3187_s20 = sshll.u32 %s2174_s15, 10  ;;  %p3188_p11 = scmp.ge.s32.totalorder %s2178_s16, 1 }
  0x3a   : > { %s2365_s27 = scalar_lea.hbm %s3131_s1, %s3187_s20  ;;  %s3190_s18 = sshll.u32 %s2306_s26, 6 }
  0x3b   : > { %p2369_p12 = pnand %p3188_p11, %p349_p9  ;;  %s332_s24 = scalar_lea.vmem [#allocation8], %s3190_s18 }
  0x3c   : > { %s341_s13 = sshll.u32 %s332_s24, 4  ;;  %s329_s10 = scalar_lea.sflag [#allocation9], %s2306_s26  ;;  %s2375_s13 = int_to_ptr.vmem [resolvable:$true] %s341_s13 }
  0x3d   : > { %s2062_s17 = scalar_lea.hbm %s2365_s27, 1024  ;;  %s2067_s30 = scalar_lea.hbm %s3131_s1, 2048 }
  0x3e   : > { %p2063_p1 = scmp.ne.s32.totalorder %s2365_s27, %s2062_s17  ;;  %p2068_p2 = scmp.lt.u32.totalorder %s2365_s27, %s3131_s1 }
  0x3f   : > { %p2069_p5 = scmp.lt.u32.totalorder %s2067_s30, %s2062_s17  ;;  %p2071_p7 = scmp.lt.u32.totalorder %s2062_s17, %s2365_s27 }
  0x40   : > { %p2065_p6 = pnand %p2063_p1, %p2034_p3 }
  0x41   : > { %p2070_p4 = por %p2069_p5, %p2068_p2 }
  0x42   : > { %p2066_p13 = pneg %p2065_p6 }
  0x43   : > { %p2072_p10 = por %p2071_p7, %p2070_p4 }
  0x45   : > { %p2073_p9 = pnand %p2072_p10, %p2066_p13 }
  0x47   : > { %2076 = shalt.err (!%p2073_p9)
}
  0x48   : > { %s2077_s18 = scalar_lea.vmem %s2375_s13, 1024  ;;  %s2183_s24 = smov [#allocation8]  }
  0x49   : > { %p2078_p11 = scmp.ne.s32.totalorder %s2375_s13, %s2077_s18  ;;  %s2082_s21 = sshll.u32 %s2183_s24, 4  ;;  %s2083_s21 = int_to_ptr.vmem [resolvable:$false] %s2082_s21 }
  0x4a   : > { %s2084_s28 = scalar_lea.vmem %s2083_s21, 2048  ;;  %p2085_p8 = scmp.lt.s32.totalorder %s2375_s13, %s2083_s21 }
  0x4b   : > { %p2080_p1 = pnand %p2078_p11, %p2034_p3  ;;  %p2086_p2 = scmp.lt.s32.totalorder %s2084_s28, %s2077_s18 }
  0x4d   : > { %p2081_p6 = pneg %p2080_p1  ;;  %p2087_p5 = por %p2086_p2, %p2085_p8 }
  0x4f   : > { %p2088_p4 = pnand %p2087_p5, %p2081_p6 }
  0x51   : > { %2091 = shalt.err (!%p2088_p4)
}
  0x52   : > { %s3191_s17 = smov 256   ;;  %353 = sbr.rel (%p2369_p12) target bundleno = 1335 (0x537), region = 56 }
  0x53   : > { %1774 = dma.hbm_to_vmem [thread:$0]  (!%p2323_p0), %s2365_s27, 1024, %s2375_s13, %s329_s10, %s3191_s17, %s3191_s17, %s2182_s29  }
  0x59   : > { %s2409_s20 = sand.u32 1, %s2162_s12   ;;  %p3192_p8 = scmp.ne.s32.totalorder %s3180_s22, 0 }
  0x5a   : > { %s2412_s30 = sshll.u32 %s2409_s20, 6  ;;  %s356_s19 = scalar_lea.sflag [#allocation6], %s2409_s20 }
  0x5b   : > { %s2416_s8 = scalar_lea.vmem [#allocation5], %s2412_s30 }
  0x5c   : > { %2145 = dma.done.wait (%p3192_p8), %s356_s19, 1024  }
  0x5d   : > { %2147 = vsyncadd (%p3192_p8), %s356_s19, 4294966272  ;;  %s365_s0 = scalar_lea.sflag [#allocation9], %s2409_s20  ;;  %s2424_s13 = scalar_lea.vmem [#allocation8], %s2412_s30 }
  0x5e   : > { %2149 = dma.done.wait (%p3192_p8), %s365_s0, 1024  }
  0x5f   : > { %2151 = vsyncadd (%p3192_p8), %s365_s0, 4294966272  ;;  %v2184_v0 = vmov 0   ;;  %v415_v1 = vld [vmem:[%s2416_s8 + $0x8] sm:$0xff]  ;;  %v417_v2 = vld [vmem:[%s2416_s8 + $0x18] sm:$0xff]  ;;  %vm445_vm0 = vcmask 261120   ;;  %vm719_vm1 = vcmask 130048  }
  0x60   : > { %481 = vmatprep.mubr.bf16.mxu0 %v2184_v0  ;;  %1835 = vset.pattern.permute.xlu1 %v2184_v0  ;;  %v414_v3 = vld [vmem:[%s2416_s8] sm:$0xff]  ;;  %v423_v4 = vpack.c.bf16 %v417_v2, %v415_v1  ;;  %v416_v5 = vld [vmem:[%s2416_s8 + $0x10] sm:$0xff]  ;;  %v419_v6 = vld [vmem:[%s2416_s8 + $0x28] sm:$0xff]  ;;  %s1553_s0 = sld [smem:[#allocation4]]  ;;  %s1761_s26 = sshll.u32 %s2170_s14, 10 }
  0x61   : > { %1834 = vset.pattern.permute.xlu0 %v2184_v0  ;;  %800 = vmatprep.mubr.bf16.mxu1 %v2184_v0  ;;  %v421_v7 = vld [vmem:[%s2416_s8 + $0x38] sm:$0xff]  ;;  %v422_v8 = vpack.c.bf16 %v416_v5, %v414_v3  ;;  %v418_v10 = vld [vmem:[%s2416_s8 + $0x20] sm:$0xff]  ;;  %v420_v11 = vld [vmem:[%s2416_s8 + $0x30] sm:$0xff]  ;;  %s3081_s27 = scalar_lea.hbm %s3139_s9, %s1761_s26  ;;  %s1596_s14 = scalar_lea.sflag [#allocation7], %s2409_s20 }
  0x62   : > { %v425_v9 = vpack.c.bf16 %v421_v7, %v419_v6  ;;  %449 = vmatprep.subr.bf16.mxu0 %v423_v4  ;;  %v505_v12 = vld [vmem:[%s2424_s13 + $0x8] sm:$0xff]  ;;  %v424_v13 = vpack.c.bf16 %v420_v11, %v418_v10  ;;  %v507_v14 = vld [vmem:[%s2424_s13 + $0x18] sm:$0xff]  ;;  %v504_v16 = vld [vmem:[%s2424_s13] sm:$0xff]  ;;  %p3271_p3 = scmp.ne.s32.totalorder %s3181_s23, 0  ;;  %s2185_s10 = smov [#allocation10]  }
  0x63   : > { %450 = vmatpush1.bf16.msra.mxu0 %v422_v8  ;;  %v513_v15 = vpack.c.bf16 %v507_v14, %v505_v12  ;;  %v506_v17 = vld [vmem:[%s2424_s13 + $0x10] sm:$0xff]  ;;  %v509_v18 = vld [vmem:[%s2424_s13 + $0x28] sm:$0xff]  ;;  %v511_v19 = vld [vmem:[%s2424_s13 + $0x38] sm:$0xff]  ;;  %s2096_s18 = sshll.u32 %s2185_s10, 4  ;;  %s2097_s18 = int_to_ptr.vmem [resolvable:$false] %s2096_s18 }
  0x64   : > { %451 = vmatprep.subr.bf16.mxu0 %v425_v9  ;;  %v1836_v20 = vld [vmem:[%s3132_s2] sm:$0xff]   ;;  %v512_v23 = vpack.c.bf16 %v506_v17, %v504_v16  ;;  %v510_v24 = vld [vmem:[%s2424_s13 + $0x30] sm:$0xff]  ;;  %v515_v26 = vpack.c.bf16 %v511_v19, %v509_v18  ;;  %v429_v27 = vld [vmem:[%s3133_s3 + $0x8] sm:$0xff]  ;;  %s2098_s24 = scalar_lea.vmem %s2097_s18, 2048 }
  0x65   : > { %v508_v21 = vld [vmem:[%s2424_s13 + $0x20] sm:$0xff]  ;;  %v519_v28 = vld [vmem:[%s3135_s5 + $0x8] sm:$0xff]  ;;  %s407_s13 = scalar_lea.vmem [#allocation10], %s2412_s30 }
  0x66   : > { %v428_v22 = vld [vmem:[%s3133_s3] sm:$0xff]  ;;  %v514_v29 = vpack.c.bf16 %v510_v24, %v508_v21  ;;  %s1609_s22 = sshll.u32 %s407_s13, 4  ;;  %s3076_s22 = int_to_ptr.vmem [resolvable:$true] %s1609_s22 }
  0x67   : > { %452 = vmatpush1.bf16.msra.mxu0 %v424_v13  ;;  %432 = vperm.xlu1 %1835, %v428_v22   ;;  %v518_v25 = vld [vmem:[%s3135_s5] sm:$0xff]  ;;  %p2099_p7 = scmp.lt.s32.totalorder %s3076_s22, %s2097_s18 }
  0x68   : > { %539 = vmatprep.subr.bf16.mxu0 %v513_v15  ;;  %522 = vperm.xlu0 %1834, %v518_v25   ;;  %v1837_v30 = vld [vmem:[%s3134_s4] sm:$0xff]  }
  0x69   : > { %v1838_v8 = vld [vmem:[%s3136_s6] sm:$0xff]  }
  0x6a   : > { %1731 = vmatmul.mubr.msk.bf16.vlgmr.msra.gmra.mrb[0].mxu0 %vm445_vm0, %v1836_v20 }
  0x6b   : > { %540 = vmatpush1.bf16.msra.mxu0 %v512_v23  ;;  %571 = vmatprep.mubr.bf16.mxu0 %v2184_v0 }
  0x6c   : > { %541 = vmatprep.subr.bf16.mxu0 %v515_v26  ;;  %437 = vperm.xlu1 %1835, %v429_v27  }
  0x6d   : > { %527 = vperm.xlu0 %1834, %v519_v28  }
  0x6f   : > { %542 = vmatpush1.bf16.msra.mxu0 %v514_v29 }
  0x70   : > { %628 = vmatprep.subr.bf16.mxu0 %v513_v15 }
  0x72   : > { %1733 = vmatmul.mubr.msk.bf16.vlgmr.msra.gmra.mrb[4].mxu0 %vm445_vm0, %v1837_v30 }
  0x73   : > { %629 = vmatpush1.bf16.msra.mxu0 %v512_v23  ;;  %660 = vmatprep.mubr.bf16.mxu0 %v2184_v0 }
  0x74   : > { %630 = vmatprep.subr.bf16.mxu0 %v515_v26 }
  0x77   : > { %631 = vmatpush1.bf16.msra.mxu0 %v514_v29 }
  0x7a   : > { %1736 = vmatmul.mubr.msk.bf16.vlgmr.msra.gmra.mrb[8].mxu0 %vm445_vm0, %v1838_v8 }
  0x7b   : > { %670 = vmatprep.mubr.bf16.mxu0 %v2184_v0 }
  0xe6   : > { %v433_v31 = vpop.permute.xlu1 %432 }
  0xe7   : > { %v523_v40 = vpop.permute.xlu0 %522 }
  0xeb   : > { %v438_v33 = vpop.permute.xlu1 %437 }
  0xec   : > { %v528_v46 = vpop.permute.xlu0 %527 }
 0x13d   : > { %v483_v32 = vpop.f32.mrb[0].mxu0 }
 0x13e   : > { %v485_v34 = vpop.f32.mrb[1].mxu0  ;;  %v484_v36 = vadd.f32 %v483_v32, %v433_v31 }
 0x13f   : > { %v487_v35 = vpop.f32.mrb[2].mxu0  ;;  %v486_v39 = vadd.f32 %v485_v34, %v433_v31 }
 0x140   : > { %v488_v37 = vadd.f32 %v487_v35, %v438_v33  ;;  %v489_v38 = vpop.f32.mrb[3].mxu0 }
 0x141   : > { %v490_v41 = vadd.f32 %v489_v38, %v438_v33 }
 0x142   : > { %v492_v42 = vpack.c.bf16 %v488_v37, %v484_v36 }
 0x143   : > { %v493_v43 = vpack.c.bf16 %v490_v41, %v486_v39 }
 0x145   : > { %v573_v44 = vpop.f32.mrb[4].mxu0  ;;  %768 = vmatprep.subr.bf16.mxu1 %v493_v43 }
 0x146   : > { %v575_v45 = vpop.f32.mrb[5].mxu0  ;;  %769 = vmatpush1.bf16.msra.mxu1 %v492_v42  ;;  %v574_v48 = vadd.f32 %v573_v44, %v523_v40 }
 0x147   : > { %v577_v47 = vpop.f32.mrb[6].mxu0  ;;  %v576_v51 = vadd.f32 %v575_v45, %v523_v40 }
 0x148   : > { %v578_v49 = vadd.f32 %v577_v47, %v528_v46  ;;  %v579_v50 = vpop.f32.mrb[7].mxu0 }
 0x149   : > { %v580_v52 = vadd.f32 %v579_v50, %v528_v46 }
 0x14a   : > { %v582_v53 = vpack.c.bf16 %v578_v49, %v574_v48 }
 0x14b   : > { %v583_v54 = vpack.c.bf16 %v580_v52, %v576_v51 }
 0x14c   : > { %687 = vxpose.xlu0.c.b16.start.end [1/1] (short) %v582_v53, 128 }
 0x14d   : > { %703 = vxpose.xlu1.c.b16.start.end [1/1] (short) %v583_v54, 128 }
 0x1b2   : > { %v695_v55 = vpop.trf.xlu0 }
 0x1b3   : > { %1738 = vmatmul.mubr.msk.bf16.vlgmr.msra.gmra.mrb[0].mxu1 %vm719_vm1, %v695_v55  ;;  %v711_v63 = vpop.trf.xlu1 }
 0x1b4   : > { %810 = vmatprep.mubr.bf16.mxu1 %v2184_v0 }
 0x1b6   : > { %v696_v56 = vpop.trf.xlu0 }
 0x1b7   : > { %v712_v1 = vpop.trf.xlu1 }
 0x1ba   : > { %v697_v57 = vpop.trf.xlu0 }
 0x1bb   : > { %1739 = vmatmul.mubr.msk.bf16.gmra.mrb[4].mxu1 %vm719_vm1, %v696_v56  ;;  %v713_v2 = vpop.trf.xlu1 }
 0x1bc   : > { %820 = vmatprep.mubr.bf16.mxu1 %v2184_v0 }
 0x1be   : > { %v698_v58 = vpop.trf.xlu0 }
 0x1bf   : > { %v714_v3 = vpop.trf.xlu1 }
 0x1c2   : > { %v699_v59 = vpop.trf.xlu0 }
 0x1c3   : > { %1740 = vmatmul.mubr.msk.bf16.gmra.mrb[8].mxu1 %vm719_vm1, %v697_v57  ;;  %v715_v4 = vpop.trf.xlu1 }
 0x1c4   : > { %830 = vmatprep.mubr.bf16.mxu1 %v2184_v0 }
 0x1c6   : > { %v700_v60 = vpop.trf.xlu0 }
 0x1c7   : > { %v716_v5 = vpop.trf.xlu1 }
 0x1ca   : > { %v701_v61 = vpop.trf.xlu0 }
 0x1cb   : > { %1741 = vmatmul.mubr.msk.bf16.gmra.mrb[12].mxu1 %vm719_vm1, %v698_v58  ;;  %v717_v6 = vpop.trf.xlu1 }
 0x1cc   : > { %840 = vmatprep.mubr.bf16.mxu1 %v2184_v0 }
 0x1ce   : > { %v702_v62 = vpop.trf.xlu0 }
 0x1cf   : > { %v718_v7 = vpop.trf.xlu1 }
 0x1d3   : > { %1742 = vmatmul.mubr.msk.bf16.gmra.mrb[16].mxu1 %vm719_vm1, %v699_v59 }
 0x1d4   : > { %850 = vmatprep.mubr.bf16.mxu1 %v2184_v0 }
 0x1db   : > { %1743 = vmatmul.mubr.msk.bf16.gmra.mrb[20].mxu1 %vm719_vm1, %v700_v60 }
 0x1dc   : > { %860 = vmatprep.mubr.bf16.mxu1 %v2184_v0 }
 0x1e3   : > { %1744 = vmatmul.mubr.msk.bf16.gmra.mrb[24].mxu1 %vm719_vm1, %v701_v61 }
 0x1e4   : > { %870 = vmatprep.mubr.bf16.mxu1 %v2184_v0 }
 0x1eb   : > { %1745 = vmatmul.mubr.msk.bf16.gmra.mrb[28].mxu1 %vm719_vm1, %v702_v62 }
 0x1ec   : > { %880 = vmatprep.mubr.bf16.mxu1 %v2184_v0 }
 0x1f3   : > { %1746 = vmatmul.mubr.msk.bf16.gmra.mrb[32].mxu1 %vm719_vm1, %v711_v63 }
 0x1f4   : > { %890 = vmatprep.mubr.bf16.mxu1 %v2184_v0 }
 0x1fb   : > { %1747 = vmatmul.mubr.msk.bf16.gmra.mrb[36].mxu1 %vm719_vm1, %v712_v1 }
 0x1fc   : > { %900 = vmatprep.mubr.bf16.mxu1 %v2184_v0 }
 0x203   : > { %1748 = vmatmul.mubr.msk.bf16.gmra.mrb[40].mxu1 %vm719_vm1, %v713_v2 }
 0x204   : > { %910 = vmatprep.mubr.bf16.mxu1 %v2184_v0 }
 0x20b   : > { %1749 = vmatmul.mubr.msk.bf16.gmra.mrb[44].mxu1 %vm719_vm1, %v714_v3 }
 0x20c   : > { %920 = vmatprep.mubr.bf16.mxu1 %v2184_v0 }
 0x213   : > { %1750 = vmatmul.mubr.msk.bf16.gmra.mrb[48].mxu1 %vm719_vm1, %v715_v4 }
 0x214   : > { %930 = vmatprep.mubr.bf16.mxu1 %v2184_v0 }
 0x21b   : > { %1751 = vmatmul.mubr.msk.bf16.gmra.mrb[52].mxu1 %vm719_vm1, %v716_v5 }
 0x21c   : > { %940 = vmatprep.mubr.bf16.mxu1 %v2184_v0 }
 0x223   : > { %1752 = vmatmul.mubr.msk.bf16.gmra.mrb[56].mxu1 %vm719_vm1, %v717_v6 }
 0x224   : > { %950 = vmatprep.mubr.bf16.mxu1 %v2184_v0 }
 0x22b   : > { %1753 = vmatmul.mubr.msk.bf16.gmra.mrb[60].mxu1 %vm719_vm1, %v718_v7 }
 0x286   : > { %v2508_v9 = vpop.f32.mrb[0].mxu1 }
 0x287   : > { %v2510_v10 = vpop.f32.mrb[1].mxu1 }
 0x288   : > { %v2512_v11 = vpop.f32.mrb[2].mxu1  ;;  %v961_v12 = vmax.f32 %v2508_v9, %v2510_v10 }
 0x289   : > { %v2516_v13 = vpop.f32.mrb[3].mxu1 }
 0x28a   : > { %962 = vmax.xlane.f32.xlu0 %v961_v12  ;;  %v964_v14 = vmax.f32 %v2512_v11, %v2516_v13 }
 0x28c   : > { %965 = vmax.xlane.f32.xlu1 %v964_v14 }
 0x28e   : > { %v2520_v15 = vpop.f32.mrb[4].mxu1 }
 0x28f   : > { %v2522_v16 = vpop.f32.mrb[5].mxu1 }
 0x290   : > { %v2524_v0 = vpop.f32.mrb[6].mxu1  ;;  %v967_v17 = vmax.f32 %v2520_v15, %v2522_v16 }
 0x291   : > { %v2528_v18 = vpop.f32.mrb[7].mxu1 }
 0x292   : > { %968 = vmax.xlane.f32.xlu0 %v967_v17  ;;  %v970_v19 = vmax.f32 %v2524_v0, %v2528_v18 }
 0x296   : > { %971 = vmax.xlane.f32.xlu0 %v970_v19  ;;  %v2532_v20 = vpop.f32.mrb[8].mxu1  ;;  %v1839_v19 = vld [vmem:[%s3136_s6 + $0x8] sm:$0xff]  }
 0x297   : > { %v2534_v21 = vpop.f32.mrb[9].mxu1  ;;  %1737 = vmatmul.mubr.msk.bf16.gmra.mrb[12].mxu0 %vm445_vm0, %v1839_v19 }
 0x298   : > { %v2536_v22 = vpop.f32.mrb[10].mxu1  ;;  %v973_v23 = vmax.f32 %v2532_v20, %v2534_v21 }
 0x299   : > { %v2540_v24 = vpop.f32.mrb[11].mxu1 }
 0x29a   : > { %974 = vmax.xlane.f32.xlu1 %v973_v23  ;;  %v976_v25 = vmax.f32 %v2536_v22, %v2540_v24 }
 0x29c   : > { %977 = vmax.xlane.f32.xlu0 %v976_v25 }
 0x29e   : > { %v2544_v26 = vpop.f32.mrb[12].mxu1 }
 0x29f   : > { %v2546_v27 = vpop.f32.mrb[13].mxu1 }
 0x2a0   : > { %v2548_v28 = vpop.f32.mrb[14].mxu1  ;;  %v979_v29 = vmax.f32 %v2544_v26, %v2546_v27 }
 0x2a1   : > { %v2552_v30 = vpop.f32.mrb[15].mxu1 }
 0x2a2   : > { %980 = vmax.xlane.f32.xlu1 %v979_v29  ;;  %v982_v31 = vmax.f32 %v2548_v28, %v2552_v30 }
 0x2a4   : > { %983 = vmax.xlane.f32.xlu0 %v982_v31 }
 0x2a6   : > { %v2556_v32 = vpop.f32.mrb[16].mxu1 }
 0x2a7   : > { %v2558_v33 = vpop.f32.mrb[17].mxu1 }
 0x2a8   : > { %v2560_v34 = vpop.f32.mrb[18].mxu1  ;;  %v985_v35 = vmax.f32 %v2556_v32, %v2558_v33 }
 0x2a9   : > { %v2564_v36 = vpop.f32.mrb[19].mxu1 }
 0x2aa   : > { %986 = vmax.xlane.f32.xlu1 %v985_v35  ;;  %v988_v37 = vmax.f32 %v2560_v34, %v2564_v36 }
 0x2ac   : > { %989 = vmax.xlane.f32.xlu0 %v988_v37 }
 0x2ae   : > { %v2568_v38 = vpop.f32.mrb[20].mxu1 }
 0x2af   : > { %v2570_v39 = vpop.f32.mrb[21].mxu1 }
 0x2b0   : > { %v2572_v40 = vpop.f32.mrb[22].mxu1  ;;  %v991_v41 = vmax.f32 %v2568_v38, %v2570_v39 }
 0x2b1   : > { %v2576_v42 = vpop.f32.mrb[23].mxu1 }
 0x2b2   : > { %992 = vmax.xlane.f32.xlu1 %v991_v41  ;;  %v994_v43 = vmax.f32 %v2572_v40, %v2576_v42 }
 0x2b4   : > { %995 = vmax.xlane.f32.xlu0 %v994_v43 }
 0x2b6   : > { %v2580_v44 = vpop.f32.mrb[24].mxu1 }
 0x2b7   : > { %v2582_v45 = vpop.f32.mrb[25].mxu1 }
 0x2b8   : > { %v2584_v46 = vpop.f32.mrb[26].mxu1  ;;  %v997_v47 = vmax.f32 %v2580_v44, %v2582_v45 }
 0x2b9   : > { %v2588_v48 = vpop.f32.mrb[27].mxu1 }
 0x2ba   : > { %998 = vmax.xlane.f32.xlu1 %v997_v47  ;;  %v1000_v49 = vmax.f32 %v2584_v46, %v2588_v48 }
 0x2bc   : > { %1001 = vmax.xlane.f32.xlu0 %v1000_v49 }
 0x2be   : > { %v2592_v50 = vpop.f32.mrb[28].mxu1 }
 0x2bf   : > { %v2594_v51 = vpop.f32.mrb[29].mxu1 }
 0x2c0   : > { %v2596_v52 = vpop.f32.mrb[30].mxu1  ;;  %v1003_v53 = vmax.f32 %v2592_v50, %v2594_v51 }
 0x2c1   : > { %v2600_v54 = vpop.f32.mrb[31].mxu1 }
 0x2c2   : > { %1004 = vmax.xlane.f32.xlu1 %v1003_v53  ;;  %v1006_v55 = vmax.f32 %v2596_v52, %v2600_v54 }
 0x2c4   : > { %1007 = vmax.xlane.f32.xlu0 %v1006_v55 }
 0x2c6   : > { %v2604_v56 = vpop.f32.mrb[32].mxu1 }
 0x2c7   : > { %v2606_v57 = vpop.f32.mrb[33].mxu1 }
 0x2c8   : > { %v2608_v58 = vpop.f32.mrb[34].mxu1  ;;  %v1009_v59 = vmax.f32 %v2604_v56, %v2606_v57 }
 0x2c9   : > { %v2612_v60 = vpop.f32.mrb[35].mxu1 }
 0x2ca   : > { %1010 = vmax.xlane.f32.xlu1 %v1009_v59  ;;  %v1012_v61 = vmax.f32 %v2608_v58, %v2612_v60 }
 0x2cc   : > { %1013 = vmax.xlane.f32.xlu0 %v1012_v61 }
 0x2ce   : > { %v2616_v62 = vpop.f32.mrb[36].mxu1 }
 0x2cf   : > { %v2618_v63 = vpop.f32.mrb[37].mxu1 }
 0x2d0   : > { %v2620_v1 = vpop.f32.mrb[38].mxu1  ;;  %v1015_v2 = vmax.f32 %v2616_v62, %v2618_v63 }
 0x2d1   : > { %v2624_v3 = vpop.f32.mrb[39].mxu1 }
 0x2d2   : > { %1016 = vmax.xlane.f32.xlu1 %v1015_v2  ;;  %v1018_v4 = vmax.f32 %v2620_v1, %v2624_v3 }
 0x2d4   : > { %1019 = vmax.xlane.f32.xlu0 %v1018_v4 }
 0x2d6   : > { %v2628_v5 = vpop.f32.mrb[40].mxu1 }
 0x2d7   : > { %v2630_v6 = vpop.f32.mrb[41].mxu1 }
 0x2d8   : > { %v2632_v7 = vpop.f32.mrb[42].mxu1  ;;  %v1021_v8 = vmax.f32 %v2628_v5, %v2630_v6 }
 0x2d9   : > { %v2636_v12 = vpop.f32.mrb[43].mxu1 }
 0x2da   : > { %1022 = vmax.xlane.f32.xlu1 %v1021_v8  ;;  %v1024_v14 = vmax.f32 %v2632_v7, %v2636_v12 }
 0x2dc   : > { %1025 = vmax.xlane.f32.xlu0 %v1024_v14 }
 0x2de   : > { %v2640_v17 = vpop.f32.mrb[44].mxu1 }
 0x2df   : > { %v2645_v23 = vpop.f32.mrb[45].mxu1 }
 0x2e0   : > { %v2647_v25 = vpop.f32.mrb[46].mxu1  ;;  %v1027_v29 = vmax.f32 %v2640_v17, %v2645_v23 }
 0x2e1   : > { %v2652_v31 = vpop.f32.mrb[47].mxu1 }
 0x2e2   : > { %1028 = vmax.xlane.f32.xlu1 %v1027_v29  ;;  %v1030_v35 = vmax.f32 %v2647_v25, %v2652_v31 }
 0x2e4   : > { %1031 = vmax.xlane.f32.xlu0 %v1030_v35 }
 0x2e6   : > { %v2656_v37 = vpop.f32.mrb[48].mxu1 }
 0x2e7   : > { %v2658_v41 = vpop.f32.mrb[49].mxu1 }
 0x2e8   : > { %v2660_v43 = vpop.f32.mrb[50].mxu1  ;;  %v1033_v47 = vmax.f32 %v2656_v37, %v2658_v41 }
 0x2e9   : > { %3193 = vst [vmem:[#allocation17_spill] sm:$0xff] %v2660_v43  ;;  %v2664_v49 = vpop.f32.mrb[51].mxu1 }
 0x2ea   : > { %3194 = vst [vmem:[#allocation18_spill] sm:$0xff] %v2664_v49  ;;  %1034 = vmax.xlane.f32.xlu1 %v1033_v47  ;;  %v1036_v53 = vmax.f32 %v2660_v43, %v2664_v49 }
 0x2ec   : > { %1037 = vmax.xlane.f32.xlu0 %v1036_v53 }
 0x2ee   : > { %v2668_v55 = vpop.f32.mrb[52].mxu1 }
 0x2ef   : > { %3195 = vst [vmem:[#allocation19_spill] sm:$0xff] %v2668_v55  ;;  %v2670_v59 = vpop.f32.mrb[53].mxu1 }
 0x2f0   : > { %3196 = vst [vmem:[#allocation20_spill] sm:$0xff] %v2670_v59  ;;  %v2672_v61 = vpop.f32.mrb[54].mxu1  ;;  %v1039_v2 = vmax.f32 %v2668_v55, %v2670_v59 }
 0x2f1   : > { %3197 = vst [vmem:[#allocation21_spill] sm:$0xff] %v2672_v61  ;;  %v2676_v4 = vpop.f32.mrb[55].mxu1 }
 0x2f2   : > { %3198 = vst [vmem:[#allocation22_spill] sm:$0xff] %v2676_v4  ;;  %1040 = vmax.xlane.f32.xlu1 %v1039_v2  ;;  %v1042_v8 = vmax.f32 %v2672_v61, %v2676_v4 }
 0x2f4   : > { %1043 = vmax.xlane.f32.xlu0 %v1042_v8 }
 0x2f6   : > { %v2680_v14 = vpop.f32.mrb[56].mxu1 }
 0x2f7   : > { %3199 = vst [vmem:[#allocation23_spill] sm:$0xff] %v2680_v14  ;;  %v2682_v19 = vpop.f32.mrb[57].mxu1 }
 0x2f8   : > { %3200 = vst [vmem:[#allocation24_spill] sm:$0xff] %v2682_v19  ;;  %v2684_v29 = vpop.f32.mrb[58].mxu1  ;;  %v1045_v35 = vmax.f32 %v2680_v14, %v2682_v19 }
 0x2f9   : > { %3201 = vst [vmem:[#allocation25_spill] sm:$0xff] %v2684_v29  ;;  %v2688_v47 = vpop.f32.mrb[59].mxu1 }
 0x2fa   : > { %3202 = vst [vmem:[#allocation26_spill] sm:$0xff] %v2688_v47  ;;  %1046 = vmax.xlane.f32.xlu1 %v1045_v35  ;;  %v1048_v53 = vmax.f32 %v2684_v29, %v2688_v47  ;;  %v588_v35 = vld [vmem:[%s3137_s7] sm:$0xff] }
 0x2fc   : > { %1049 = vmax.xlane.f32.xlu0 %v1048_v53  ;;  %v2707_v53 = vpop.f32.mrb[8].mxu0 }
 0x2fd   : > { %3207 = vst [vmem:[#allocation31_spill] sm:$0xff] %v2707_v53  ;;  %v2709_v47 = vpop.f32.mrb[9].mxu0 }
 0x2fe   : > { %v2692_v2 = vpop.f32.mrb[60].mxu1  ;;  %3208 = vst [vmem:[#allocation32_spill] sm:$0xff] %v2709_v47 }
 0x2ff   : > { %3203 = vst [vmem:[#allocation27_spill] sm:$0xff] %v2692_v2  ;;  %v2694_v4 = vpop.f32.mrb[61].mxu1 }
 0x300   : > { %3204 = vst [vmem:[#allocation28_spill] sm:$0xff] %v2694_v4  ;;  %v2696_v8 = vpop.f32.mrb[62].mxu1  ;;  %v1051_v61 = vmax.f32 %v2692_v2, %v2694_v4 }
 0x301   : > { %3205 = vst [vmem:[#allocation29_spill] sm:$0xff] %v2696_v8  ;;  %v2700_v59 = vpop.f32.mrb[63].mxu1 }
 0x302   : > { %3206 = vst [vmem:[#allocation30_spill] sm:$0xff] %v2700_v59  ;;  %v1054_v19 = vmax.f32 %v2696_v8, %v2700_v59  ;;  %1052 = vmax.xlane.f32.xlu1 %v1051_v61 }
 0x304   : > { %1055 = vmax.xlane.f32.xlu0 %v1054_v19 }
 0x313   : > { %594 = vperm.xlu1 %1835, %v588_v35  }
 0x317   : > { %v963_v2 = vpop.xlane.xlu0 %962 }
 0x318   : > { %v1057_v61 = vsub.f32 %v2508_v9, %v963_v2  ;;  %v1058_v19 = vsub.f32 %v2510_v10, %v963_v2 }
 0x319   : > { %v966_v29 = vpop.xlane.xlu1 %965 }
 0x31a   : > { %v1059_v14 = vsub.f32 %v2512_v11, %v966_v29  ;;  %v1060_v4 = vsub.f32 %v2516_v13, %v966_v29  ;;  %v1121_v35 = vmul.f32 1.442695, %v1057_v61  ;;  %v1123_v8 = vmul.f32 1.442695, %v1058_v19 }
 0x31c   : > { %v1125_v55 = vmul.f32 1.442695, %v1059_v14  ;;  %v1127_v49 = vmul.f32 1.442695, %v1060_v4 }
 0x31e   : > { %1840 = vpow2.f32 %v1125_v55 }
 0x31f   : > { %1842 = vpow2.f32 %v1127_v49  ;;  %v969_v59 = vpop.xlane.xlu0 %968 }
 0x320   : > { %v1061_v53 = vsub.f32 %v2520_v15, %v969_v59  ;;  %v1062_v43 = vsub.f32 %v2522_v16, %v969_v59  ;;  %1844 = vpow2.f32 %v1121_v35 }
 0x321   : > { %1846 = vpow2.f32 %v1123_v8 }
 0x322   : > { %v1129_v9 = vmul.f32 1.442695, %v1061_v53  ;;  %v1131_v49 = vmul.f32 1.442695, %v1062_v43 }
 0x323   : > { %v972_v47 = vpop.xlane.xlu0 %971 }
 0x324   : > { %v1063_v11 = vsub.f32 %v2524_v0, %v972_v47  ;;  %v1064_v13 = vsub.f32 %v2528_v18, %v972_v47 }
 0x326   : > { %v1133_v4 = vmul.f32 1.442695, %v1063_v11  ;;  %v1135_v14 = vmul.f32 1.442695, %v1064_v13 }
 0x327   : > { %v975_v55 = vpop.xlane.xlu1 %974 }
 0x328   : > { %v2719_v10 = vpop.eup %1840  ;;  %1848 = vpow2.f32 %v1133_v4  ;;  %v1065_v29 = vsub.f32 %v2532_v20, %v975_v55  ;;  %v1066_v15 = vsub.f32 %v2534_v21, %v975_v55 }
 0x329   : > { %v2723_v2 = vpop.eup %1842  ;;  %1850 = vpow2.f32 %v1135_v14  ;;  %v978_v16 = vpop.xlane.xlu0 %977 }
 0x32a   : > { %v1137_v0 = vmul.f32 1.442695, %v1065_v29  ;;  %v1067_v18 = vsub.f32 %v2536_v22, %v978_v16  ;;  %v1068_v59 = vsub.f32 %v2540_v24, %v978_v16  ;;  %1852 = vpow2.f32 %v1129_v9  ;;  %v2729_v21 = vpop.eup %1844 }
 0x32b   : > { %v1252_v47 = vadd.f32 %v2723_v2, %v2719_v10  ;;  %1854 = vpow2.f32 %v1131_v49  ;;  %v1139_v43 = vmul.f32 1.442695, %v1066_v15  ;;  %v2733_v61 = vpop.eup %1846 }
 0x32c   : > { %v1141_v8 = vmul.f32 1.442695, %v1067_v18  ;;  %v1143_v53 = vmul.f32 1.442695, %v1068_v59  ;;  %1856 = vpow2.f32 %v1137_v0  ;;  %v1249_v29 = vadd.f32 %v2733_v61, %v2729_v21 }
 0x32d   : > { %1253 = vadd.xlane.f32.xlu0 %v1252_v47 }
 0x32e   : > { %1858 = vpow2.f32 %v1141_v8 }
 0x32f   : > { %1860 = vpow2.f32 %v1143_v53  ;;  %v981_v20 = vpop.xlane.xlu1 %980 }
 0x330   : > { %1862 = vpow2.f32 %v1139_v43  ;;  %v1069_v22 = vsub.f32 %v2544_v26, %v981_v20  ;;  %v1070_v24 = vsub.f32 %v2546_v27, %v981_v20 }
 0x331   : > { %v984_v19 = vpop.xlane.xlu0 %983 }
 0x332   : > { %v2735_v35 = vpop.eup %1848  ;;  %v1145_v11 = vmul.f32 1.442695, %v1069_v22  ;;  %v1147_v13 = vmul.f32 1.442695, %v1070_v24  ;;  %v1071_v4 = vsub.f32 %v2548_v28, %v984_v19  ;;  %v1072_v14 = vsub.f32 %v2552_v30, %v984_v19 }
 0x333   : > { %v2739_v9 = vpop.eup %1850 }
 0x334   : > { %1864 = vpow2.f32 %v1145_v11  ;;  %v1149_v55 = vmul.f32 1.442695, %v1071_v4  ;;  %v1151_v49 = vmul.f32 1.442695, %v1072_v14  ;;  %v1258_v26 = vadd.f32 %v2739_v9, %v2735_v35  ;;  %v2743_v27 = vpop.eup %1852 }
 0x335   : > { %1866 = vpow2.f32 %v1147_v13  ;;  %v2747_v15 = vpop.eup %1854 }
 0x336   : > { %1868 = vpow2.f32 %v1149_v55  ;;  %1259 = vadd.xlane.f32.xlu0 %v1258_v26  ;;  %v2749_v28 = vpop.eup %1856  ;;  %v1255_v43 = vadd.f32 %v2747_v15, %v2743_v27 }
 0x337   : > { %1870 = vpow2.f32 %v1151_v49  ;;  %v987_v30 = vpop.xlane.xlu1 %986  ;;  %1250 = vadd.xlane.f32.xlu1 %v1249_v29 }
 0x338   : > { %v2751_v16 = vpop.eup %1858  ;;  %v1073_v0 = vsub.f32 %v2556_v32, %v987_v30  ;;  %v1074_v18 = vsub.f32 %v2558_v33, %v987_v30 }
 0x339   : > { %v2755_v59 = vpop.eup %1860  ;;  %v990_v47 = vpop.xlane.xlu0 %989 }
 0x33a   : > { %v2759_v8 = vpop.eup %1862  ;;  %v1153_v53 = vmul.f32 1.442695, %v1073_v0  ;;  %v1155_v20 = vmul.f32 1.442695, %v1074_v18  ;;  %v1075_v22 = vsub.f32 %v2560_v34, %v990_v47  ;;  %v1076_v24 = vsub.f32 %v2564_v36, %v990_v47 }
 0x33b   : > { %1256 = vadd.xlane.f32.xlu1 %v1255_v43  ;;  %v1264_v32 = vadd.f32 %v2755_v59, %v2751_v16  ;;  %v1261_v11 = vadd.f32 %v2759_v8, %v2749_v28 }
 0x33c   : > { %1872 = vpow2.f32 %v1153_v53  ;;  %v1157_v33 = vmul.f32 1.442695, %v1075_v22  ;;  %v1159_v19 = vmul.f32 1.442695, %v1076_v24 }
 0x33d   : > { %1874 = vpow2.f32 %v1155_v20  ;;  %1265 = vadd.xlane.f32.xlu0 %v1264_v32 }
 0x33e   : > { %v2767_v13 = vpop.eup %1864  ;;  %1876 = vpow2.f32 %v1157_v33 }
 0x33f   : > { %v2769_v4 = vpop.eup %1866  ;;  %1878 = vpow2.f32 %v1159_v19  ;;  %v993_v34 = vpop.xlane.xlu1 %992  ;;  %1262 = vadd.xlane.f32.xlu1 %v1261_v11 }
 0x340   : > { %v2771_v36 = vpop.eup %1868  ;;  %v1077_v14 = vsub.f32 %v2568_v38, %v993_v34  ;;  %v1078_v55 = vsub.f32 %v2570_v39, %v993_v34  ;;  %v1267_v29 = vadd.f32 %v2769_v4, %v2767_v13 }
 0x341   : > { %v2775_v49 = vpop.eup %1870  ;;  %v996_v26 = vpop.xlane.xlu0 %995 }
 0x342   : > { %v1161_v30 = vmul.f32 1.442695, %v1077_v14  ;;  %v1163_v0 = vmul.f32 1.442695, %v1078_v55  ;;  %v1079_v18 = vsub.f32 %v2572_v40, %v996_v26  ;;  %v1080_v47 = vsub.f32 %v2576_v42, %v996_v26 }
 0x343   : > { %1268 = vadd.xlane.f32.xlu1 %v1267_v29  ;;  %v1270_v43 = vadd.f32 %v2775_v49, %v2771_v36 }
 0x344   : > { %1880 = vpow2.f32 %v1161_v30  ;;  %v1165_v38 = vmul.f32 1.442695, %v1079_v18  ;;  %v1167_v53 = vmul.f32 1.442695, %v1080_v47 }
 0x345   : > { %1882 = vpow2.f32 %v1163_v0  ;;  %1271 = vadd.xlane.f32.xlu0 %v1270_v43 }
 0x346   : > { %v2783_v39 = vpop.eup %1872  ;;  %1884 = vpow2.f32 %v1165_v38 }
 0x347   : > { %v2785_v20 = vpop.eup %1874  ;;  %1886 = vpow2.f32 %v1167_v53  ;;  %v999_v22 = vpop.xlane.xlu1 %998 }
 0x348   : > { %v2787_v24 = vpop.eup %1876  ;;  %v1081_v40 = vsub.f32 %v2580_v44, %v999_v22  ;;  %v1082_v42 = vsub.f32 %v2582_v45, %v999_v22  ;;  %v1273_v32 = vadd.f32 %v2785_v20, %v2783_v39 }
 0x349   : > { %v2793_v33 = vpop.eup %1878  ;;  %v1002_v19 = vpop.xlane.xlu0 %1001 }
 0x34a   : > { %v1169_v11 = vmul.f32 1.442695, %v1081_v40  ;;  %v1171_v34 = vmul.f32 1.442695, %v1082_v42  ;;  %v1083_v14 = vsub.f32 %v2584_v46, %v1002_v19  ;;  %v1084_v55 = vsub.f32 %v2588_v48, %v1002_v19  ;;  %1274 = vadd.xlane.f32.xlu1 %v1273_v32 }
 0x34b   : > { %v1276_v26 = vadd.f32 %v2793_v33, %v2787_v24 }
 0x34c   : > { %1888 = vpow2.f32 %v1169_v11  ;;  %v1173_v44 = vmul.f32 1.442695, %v1083_v14  ;;  %v1175_v29 = vmul.f32 1.442695, %v1084_v55 }
 0x34d   : > { %1890 = vpow2.f32 %v1171_v34  ;;  %1277 = vadd.xlane.f32.xlu0 %v1276_v26 }
 0x34e   : > { %v2799_v45 = vpop.eup %1880  ;;  %1892 = vpow2.f32 %v1173_v44 }
 0x34f   : > { %v2801_v30 = vpop.eup %1882  ;;  %1894 = vpow2.f32 %v1175_v29  ;;  %v1005_v0 = vpop.xlane.xlu1 %1004 }
 0x350   : > { %v2803_v18 = vpop.eup %1884  ;;  %v1085_v46 = vsub.f32 %v2592_v50, %v1005_v0  ;;  %v1086_v48 = vsub.f32 %v2594_v51, %v1005_v0  ;;  %v1279_v47 = vadd.f32 %v2801_v30, %v2799_v45 }
 0x351   : > { %v2809_v43 = vpop.eup %1886  ;;  %v1008_v38 = vpop.xlane.xlu0 %1007 }
 0x352   : > { %v1177_v53 = vmul.f32 1.442695, %v1085_v46  ;;  %v1179_v22 = vmul.f32 1.442695, %v1086_v48  ;;  %v1087_v40 = vsub.f32 %v2596_v52, %v1008_v38  ;;  %v1088_v42 = vsub.f32 %v2600_v54, %v1008_v38  ;;  %1280 = vadd.xlane.f32.xlu1 %v1279_v47 }
 0x353   : > { %v1282_v32 = vadd.f32 %v2809_v43, %v2803_v18 }
 0x354   : > { %1896 = vpow2.f32 %v1177_v53  ;;  %v1181_v50 = vmul.f32 1.442695, %v1087_v40  ;;  %v1183_v19 = vmul.f32 1.442695, %v1088_v42 }
 0x355   : > { %1898 = vpow2.f32 %v1179_v22  ;;  %1283 = vadd.xlane.f32.xlu0 %v1282_v32 }
 0x356   : > { %v2815_v51 = vpop.eup %1888  ;;  %1900 = vpow2.f32 %v1181_v50 }
 0x357   : > { %v2817_v11 = vpop.eup %1890  ;;  %1902 = vpow2.f32 %v1183_v19  ;;  %v1011_v34 = vpop.xlane.xlu1 %1010 }
 0x358   : > { %v2819_v14 = vpop.eup %1892  ;;  %v1089_v52 = vsub.f32 %v2604_v56, %v1011_v34  ;;  %v1090_v54 = vsub.f32 %v2606_v57, %v1011_v34  ;;  %v1285_v55 = vadd.f32 %v2817_v11, %v2815_v51 }
 0x359   : > { %v2825_v26 = vpop.eup %1894  ;;  %v1014_v44 = vpop.xlane.xlu0 %1013 }
 0x35a   : > { %v1185_v29 = vmul.f32 1.442695, %v1089_v52  ;;  %v1187_v0 = vmul.f32 1.442695, %v1090_v54  ;;  %v1091_v46 = vsub.f32 %v2608_v58, %v1014_v44  ;;  %v1092_v48 = vsub.f32 %v2612_v60, %v1014_v44  ;;  %1286 = vadd.xlane.f32.xlu1 %v1285_v55 }
 0x35b   : > { %v1288_v47 = vadd.f32 %v2825_v26, %v2819_v14 }
 0x35c   : > { %1904 = vpow2.f32 %v1185_v29  ;;  %v1189_v56 = vmul.f32 1.442695, %v1091_v46  ;;  %v1191_v38 = vmul.f32 1.442695, %v1092_v48 }
 0x35d   : > { %1906 = vpow2.f32 %v1187_v0  ;;  %1289 = vadd.xlane.f32.xlu0 %v1288_v47 }
 0x35e   : > { %v2831_v57 = vpop.eup %1896  ;;  %1908 = vpow2.f32 %v1189_v56 }
 0x35f   : > { %v2833_v53 = vpop.eup %1898  ;;  %1910 = vpow2.f32 %v1191_v38  ;;  %v1017_v22 = vpop.xlane.xlu1 %1016 }
 0x360   : > { %v2835_v40 = vpop.eup %1900  ;;  %v1093_v58 = vsub.f32 %v2616_v62, %v1017_v22  ;;  %v1094_v60 = vsub.f32 %v2618_v63, %v1017_v22  ;;  %v1291_v42 = vadd.f32 %v2833_v53, %v2831_v57 }
 0x361   : > { %v2841_v32 = vpop.eup %1902  ;;  %v1020_v50 = vpop.xlane.xlu0 %1019 }
 0x362   : > { %v1193_v19 = vmul.f32 1.442695, %v1093_v58  ;;  %v1195_v34 = vmul.f32 1.442695, %v1094_v60  ;;  %v1095_v52 = vsub.f32 %v2620_v1, %v1020_v50  ;;  %v1096_v54 = vsub.f32 %v2624_v3, %v1020_v50  ;;  %1292 = vadd.xlane.f32.xlu1 %v1291_v42 }
 0x363   : > { %v1294_v55 = vadd.f32 %v2841_v32, %v2835_v40 }
 0x364   : > { %1912 = vpow2.f32 %v1193_v19  ;;  %v1197_v62 = vmul.f32 1.442695, %v1095_v52  ;;  %v1199_v44 = vmul.f32 1.442695, %v1096_v54 }
 0x365   : > { %1914 = vpow2.f32 %v1195_v34  ;;  %1295 = vadd.xlane.f32.xlu0 %v1294_v55 }
 0x366   : > { %v2847_v63 = vpop.eup %1904  ;;  %1916 = vpow2.f32 %v1197_v62 }
 0x367   : > { %v2849_v29 = vpop.eup %1906  ;;  %1918 = vpow2.f32 %v1199_v44  ;;  %v1023_v0 = vpop.xlane.xlu1 %1022 }
 0x368   : > { %v2851_v46 = vpop.eup %1908  ;;  %v1097_v1 = vsub.f32 %v2628_v5, %v1023_v0  ;;  %v1098_v3 = vsub.f32 %v2630_v6, %v1023_v0  ;;  %v1297_v48 = vadd.f32 %v2849_v29, %v2847_v63 }
 0x369   : > { %v2857_v47 = vpop.eup %1910  ;;  %v1026_v56 = vpop.xlane.xlu0 %1025 }
 0x36a   : > { %v1201_v38 = vmul.f32 1.442695, %v1097_v1  ;;  %v1203_v22 = vmul.f32 1.442695, %v1098_v3  ;;  %v1099_v58 = vsub.f32 %v2632_v7, %v1026_v56  ;;  %v1100_v60 = vsub.f32 %v2636_v12, %v1026_v56  ;;  %1298 = vadd.xlane.f32.xlu1 %v1297_v48 }
 0x36b   : > { %v1300_v42 = vadd.f32 %v2857_v47, %v2851_v46 }
 0x36c   : > { %1920 = vpow2.f32 %v1201_v38  ;;  %v1205_v5 = vmul.f32 1.442695, %v1099_v58  ;;  %v1207_v50 = vmul.f32 1.442695, %v1100_v60 }
 0x36d   : > { %1922 = vpow2.f32 %v1203_v22  ;;  %1301 = vadd.xlane.f32.xlu0 %v1300_v42 }
 0x36e   : > { %v2863_v6 = vpop.eup %1912  ;;  %1924 = vpow2.f32 %v1205_v5 }
 0x36f   : > { %v2865_v19 = vpop.eup %1914  ;;  %1926 = vpow2.f32 %v1207_v50  ;;  %v1029_v34 = vpop.xlane.xlu1 %1028 }
 0x370   : > { %v2867_v52 = vpop.eup %1916  ;;  %v1101_v7 = vsub.f32 %v2640_v17, %v1029_v34  ;;  %v1102_v12 = vsub.f32 %v2645_v23, %v1029_v34  ;;  %v1303_v54 = vadd.f32 %v2865_v19, %v2863_v6 }
 0x371   : > { %v2873_v55 = vpop.eup %1918  ;;  %v1032_v62 = vpop.xlane.xlu0 %1031 }
 0x372   : > { %v1209_v44 = vmul.f32 1.442695, %v1101_v7  ;;  %v1211_v0 = vmul.f32 1.442695, %v1102_v12  ;;  %v1103_v1 = vsub.f32 %v2647_v25, %v1032_v62  ;;  %v1104_v3 = vsub.f32 %v2652_v31, %v1032_v62  ;;  %1304 = vadd.xlane.f32.xlu1 %v1303_v54  ;;  %v3209_v7 = vld [vmem:[#allocation17_spill] sm:$0xff]  ;;  %v3210_v54 = vld [vmem:[#allocation18_spill] sm:$0xff] }
 0x373   : > { %v1306_v48 = vadd.f32 %v2873_v55, %v2867_v52 }
 0x374   : > { %1928 = vpow2.f32 %v1209_v44  ;;  %v1213_v17 = vmul.f32 1.442695, %v1103_v1  ;;  %v1215_v56 = vmul.f32 1.442695, %v1104_v3 }
 0x375   : > { %1930 = vpow2.f32 %v1211_v0  ;;  %1307 = vadd.xlane.f32.xlu0 %v1306_v48 }
 0x376   : > { %v2879_v23 = vpop.eup %1920  ;;  %1932 = vpow2.f32 %v1213_v17  ;;  %v3214_v17 = vld [vmem:[#allocation19_spill] sm:$0xff] }
 0x377   : > { %v2881_v38 = vpop.eup %1922  ;;  %1934 = vpow2.f32 %v1215_v56  ;;  %v1035_v22 = vpop.xlane.xlu1 %1034 }
 0x378   : > { %v2883_v58 = vpop.eup %1924  ;;  %v1105_v25 = vsub.f32 %v2656_v37, %v1035_v22  ;;  %v1106_v31 = vsub.f32 %v2658_v41, %v1035_v22  ;;  %v1309_v60 = vadd.f32 %v2881_v38, %v2879_v23  ;;  %v3215_v22 = vld [vmem:[#allocation20_spill] sm:$0xff] }
 0x379   : > { %v2889_v42 = vpop.eup %1926  ;;  %v1038_v5 = vpop.xlane.xlu0 %1037 }
 0x37a   : > { %v1217_v50 = vmul.f32 1.442695, %v1105_v25  ;;  %v1219_v34 = vmul.f32 1.442695, %v1106_v31  ;;  %v1107_v12 = vsub.f32 %v3209_v7, %v1038_v5  ;;  %v1108_v62 = vsub.f32 %v3210_v54, %v1038_v5  ;;  %1310 = vadd.xlane.f32.xlu1 %v1309_v60  ;;  %v3217_v7 = vld [vmem:[#allocation21_spill] sm:$0xff]  ;;  %v3218_v54 = vld [vmem:[#allocation22_spill] sm:$0xff] }
 0x37b   : > { %v1312_v44 = vadd.f32 %v2889_v42, %v2883_v58 }
 0x37c   : > { %1936 = vpow2.f32 %v1217_v50  ;;  %v1221_v37 = vmul.f32 1.442695, %v1107_v12  ;;  %v1223_v0 = vmul.f32 1.442695, %v1108_v62 }
 0x37d   : > { %1938 = vpow2.f32 %v1219_v34  ;;  %1313 = vadd.xlane.f32.xlu0 %v1312_v44 }
 0x37e   : > { %v2895_v41 = vpop.eup %1928  ;;  %1940 = vpow2.f32 %v1221_v37 }
 0x37f   : > { %3211 = vst [vmem:[#allocation17_spill] sm:$0xff] %v2895_v41  ;;  %v2897_v1 = vpop.eup %1930  ;;  %1942 = vpow2.f32 %v1223_v0  ;;  %v1041_v3 = vpop.xlane.xlu1 %1040 }
 0x380   : > { %3212 = vst [vmem:[#allocation18_spill] sm:$0xff] %v2897_v1  ;;  %v2899_v48 = vpop.eup %1932  ;;  %v1109_v56 = vsub.f32 %v3214_v17, %v1041_v3  ;;  %v1110_v25 = vsub.f32 %v3215_v22, %v1041_v3  ;;  %v1315_v31 = vadd.f32 %v2897_v1, %v2895_v41 }
 0x381   : > { %3213 = vst [vmem:[#allocation33_spill] sm:$0xff] %v2899_v48  ;;  %v2905_v60 = vpop.eup %1934  ;;  %v1044_v5 = vpop.xlane.xlu0 %1043 }
 0x382   : > { %3216 = vst [vmem:[#allocation19_spill] sm:$0xff] %v2905_v60  ;;  %v1225_v50 = vmul.f32 1.442695, %v1109_v56  ;;  %v1227_v34 = vmul.f32 1.442695, %v1110_v25  ;;  %v1111_v12 = vsub.f32 %v3217_v7, %v1044_v5  ;;  %v1112_v62 = vsub.f32 %v3218_v54, %v1044_v5  ;;  %1316 = vadd.xlane.f32.xlu1 %v1315_v31  ;;  %v3222_v25 = vld [vmem:[#allocation23_spill] sm:$0xff] }
 0x383   : > { %v1318_v44 = vadd.f32 %v2905_v60, %v2899_v48  ;;  %v3223_v31 = vld [vmem:[#allocation24_spill] sm:$0xff]  ;;  %v3226_v48 = vld [vmem:[#allocation26_spill] sm:$0xff] }
 0x384   : > { %1944 = vpow2.f32 %v1225_v50  ;;  %v1229_v37 = vmul.f32 1.442695, %v1111_v12  ;;  %v1231_v0 = vmul.f32 1.442695, %v1112_v62 }
 0x385   : > { %1946 = vpow2.f32 %v1227_v34  ;;  %1319 = vadd.xlane.f32.xlu0 %v1318_v44  ;;  %v3225_v44 = vld [vmem:[#allocation25_spill] sm:$0xff] }
 0x386   : > { %v2911_v3 = vpop.eup %1936  ;;  %1948 = vpow2.f32 %v1229_v37 }
 0x387   : > { %3219 = vst [vmem:[#allocation20_spill] sm:$0xff] %v2911_v3  ;;  %v2913_v17 = vpop.eup %1938  ;;  %1950 = vpow2.f32 %v1231_v0  ;;  %v1047_v56 = vpop.xlane.xlu1 %1046 }
 0x388   : > { %3220 = vst [vmem:[#allocation21_spill] sm:$0xff] %v2913_v17  ;;  %v2915_v22 = vpop.eup %1940  ;;  %v1113_v5 = vsub.f32 %v3222_v25, %v1047_v56  ;;  %v1114_v7 = vsub.f32 %v3223_v31, %v1047_v56  ;;  %v1321_v50 = vadd.f32 %v2913_v17, %v2911_v3  ;;  %v3232_v3 = vld [vmem:[#allocation30_spill] sm:$0xff] }
 0x389   : > { %3221 = vst [vmem:[#allocation22_spill] sm:$0xff] %v2915_v22  ;;  %v2921_v12 = vpop.eup %1942  ;;  %v1050_v34 = vpop.xlane.xlu0 %1049 }
 0x38a   : > { %3224 = vst [vmem:[#allocation23_spill] sm:$0xff] %v2921_v12  ;;  %v1233_v54 = vmul.f32 1.442695, %v1113_v5  ;;  %v1235_v62 = vmul.f32 1.442695, %v1114_v7  ;;  %v1115_v37 = vsub.f32 %v3225_v44, %v1050_v34  ;;  %v1116_v41 = vsub.f32 %v3226_v48, %v1050_v34  ;;  %1322 = vadd.xlane.f32.xlu1 %v1321_v50  ;;  %v3229_v44 = vld [vmem:[#allocation27_spill] sm:$0xff] }
 0x38b   : > { %v1324_v0 = vadd.f32 %v2921_v12, %v2915_v22  ;;  %v3230_v50 = vld [vmem:[#allocation28_spill] sm:$0xff] }
 0x38c   : > { %1952 = vpow2.f32 %v1233_v54  ;;  %v1237_v25 = vmul.f32 1.442695, %v1115_v37  ;;  %v1239_v60 = vmul.f32 1.442695, %v1116_v41 }
 0x38d   : > { %1954 = vpow2.f32 %v1235_v62  ;;  %1325 = vadd.xlane.f32.xlu0 %v1324_v0 }
 0x38e   : > { %v2927_v56 = vpop.eup %1944  ;;  %1956 = vpow2.f32 %v1237_v25  ;;  %v3231_v25 = vld [vmem:[#allocation29_spill] sm:$0xff] }
 0x38f   : > { %3227 = vst [vmem:[#allocation24_spill] sm:$0xff] %v2927_v56  ;;  %v2929_v31 = vpop.eup %1946  ;;  %1958 = vpow2.f32 %v1239_v60  ;;  %v1053_v5 = vpop.xlane.xlu1 %1052 }
 0x390   : > { %3228 = vst [vmem:[#allocation25_spill] sm:$0xff] %v2929_v31  ;;  %v2931_v7 = vpop.eup %1948  ;;  %v1117_v48 = vsub.f32 %v3229_v44, %v1053_v5  ;;  %v1118_v34 = vsub.f32 %v3230_v50, %v1053_v5  ;;  %v1327_v54 = vadd.f32 %v2929_v31, %v2927_v56  ;;  %v3233_v50 = vld [vmem:[#allocation31_spill] sm:$0xff]  ;;  %v3235_v56 = vld [vmem:[#allocation32_spill] sm:$0xff] }
 0x391   : > { %v2937_v37 = vpop.eup %1950  ;;  %v1056_v41 = vpop.xlane.xlu0 %1055 }
 0x392   : > { %v1241_v62 = vmul.f32 1.442695, %v1117_v48  ;;  %v1243_v0 = vmul.f32 1.442695, %v1118_v34  ;;  %1328 = vadd.xlane.f32.xlu1 %v1327_v54  ;;  %v1119_v22 = vsub.f32 %v3231_v25, %v1056_v41  ;;  %v1120_v60 = vsub.f32 %v3232_v3, %v1056_v41 }
 0x393   : > { %v595_v12 = vpop.permute.xlu1 %594  ;;  %v1330_v17 = vadd.f32 %v2937_v37, %v2931_v7 }
 0x394   : > { %1960 = vpow2.f32 %v1241_v62  ;;  %v1245_v44 = vmul.f32 1.442695, %v1119_v22  ;;  %v1247_v5 = vmul.f32 1.442695, %v1120_v60  ;;  %v2944_v1 = vadd.f32 %v3233_v50, %v595_v12  ;;  %v590_v60 = vld [vmem:[%s3137_s7 + $0x10] sm:$0xff] }
 0x395   : > { %1962 = vpow2.f32 %v1243_v0  ;;  %v2947_v31 = vadd.f32 %v3235_v56, %v595_v12  ;;  %1331 = vadd.xlane.f32.xlu0 %v1330_v17 }
 0x396   : > { %3234 = vst [vmem:[#allocation26_spill] sm:$0xff] %v2944_v1  ;;  %v2949_v48 = vpop.eup %1952  ;;  %1964 = vpow2.f32 %v1245_v44  ;;  %v2976_v44 = vpop.f32.mrb[10].mxu0 }
 0x397   : > { %3236 = vst [vmem:[#allocation27_spill] sm:$0xff] %v2947_v31  ;;  %v2951_v34 = vpop.eup %1954  ;;  %1966 = vpow2.f32 %v1247_v5  ;;  %3242 = vst [vmem:[#allocation34_spill] sm:$0xff] %v2976_v44  ;;  %v2978_v5 = vpop.f32.mrb[11].mxu0 }
 0x398   : > { %v2953_v3 = vpop.eup %1956  ;;  %v1333_v22 = vadd.f32 %v2951_v34, %v2949_v48  ;;  %3243 = vst [vmem:[#allocation35_spill] sm:$0xff] %v2978_v5  ;;  %v2980_v50 = vpop.f32.mrb[12].mxu0 }
 0x399   : > { %3237 = vst [vmem:[#allocation28_spill] sm:$0xff] %v2953_v3  ;;  %v2957_v54 = vpop.eup %1958  ;;  %3244 = vst [vmem:[#allocation36_spill] sm:$0xff] %v2980_v50 }
 0x39a   : > { %1334 = vadd.xlane.f32.xlu1 %v1333_v22  ;;  %v1336_v41 = vadd.f32 %v2957_v54, %v2953_v3  ;;  %v591_v22 = vld [vmem:[%s3137_s7 + $0x18] sm:$0xff] }
 0x39c   : > { %1337 = vadd.xlane.f32.xlu0 %v1336_v41  ;;  %v2985_v41 = vpop.f32.mrb[13].mxu0 }
 0x39d   : > { %3245 = vst [vmem:[#allocation37_spill] sm:$0xff] %v2985_v41 }
 0x39e   : > { %v2961_v12 = vpop.eup %1960 }
 0x39f   : > { %3238 = vst [vmem:[#allocation29_spill] sm:$0xff] %v2961_v12  ;;  %v2963_v17 = vpop.eup %1962 }
 0x3a0   : > { %3239 = vst [vmem:[#allocation30_spill] sm:$0xff] %v2963_v17  ;;  %v2965_v56 = vpop.eup %1964  ;;  %v1339_v62 = vadd.f32 %v2963_v17, %v2961_v12 }
 0x3a1   : > { %3240 = vst [vmem:[#allocation31_spill] sm:$0xff] %v2965_v56  ;;  %v2969_v0 = vpop.eup %1966 }
 0x3a2   : > { %3241 = vst [vmem:[#allocation32_spill] sm:$0xff] %v2969_v0  ;;  %1340 = vadd.xlane.f32.xlu1 %v1339_v62  ;;  %v1342_v25 = vadd.f32 %v2969_v0, %v2965_v56  ;;  %v2987_v62 = vpop.f32.mrb[14].mxu0  ;;  %v589_v56 = vld [vmem:[%s3137_s7 + $0x8] sm:$0xff] }
 0x3a3   : > { %3246 = vst [vmem:[#allocation38_spill] sm:$0xff] %v2987_v62 }
 0x3a4   : > { %1343 = vadd.xlane.f32.xlu0 %v1342_v25  ;;  %v2989_v25 = vpop.f32.mrb[15].mxu0 }
 0x3a5   : > { %3247 = vst [vmem:[#allocation39_spill] sm:$0xff] %v2989_v25 }
 0x3b3   : > { %604 = vperm.xlu1 %1835, %v590_v60  }
 0x3b7   : > { %609 = vperm.xlu1 %1835, %v591_v22  }
 0x3ba   : > { %599 = vperm.xlu0 %1834, %v589_v56   ;;  %v1254_v12 = vpop.xlane.xlu0 %1253 }
 0x3bb   : > { %1968 = vrcp.f32 %v1254_v12 }
 0x3c3   : > { %v1260_v60 = vpop.xlane.xlu0 %1259 }
 0x3c4   : > { %v1251_v0 = vpop.xlane.xlu1 %1250 }
 0x3c5   : > { %1970 = vrcp.f32 %v1251_v0  ;;  %v1969_v5 = vpop.eup %1968 }
 0x3c6   : > { %1972 = vrcp.f32 %v1260_v60  ;;  %v1380_v62 = vmul.f32 %v1969_v5, %v2723_v2  ;;  %v1379_v12 = vmul.f32 %v1969_v5, %v2719_v10 }
 0x3c8   : > { %v1257_v17 = vpop.xlane.xlu1 %1256 }
 0x3c9   : > { %1974 = vrcp.f32 %v1257_v17 }
 0x3ca   : > { %v1266_v31 = vpop.xlane.xlu0 %1265 }
 0x3cb   : > { %1976 = vrcp.f32 %v1266_v31 }
 0x3cc   : > { %v1263_v1 = vpop.xlane.xlu1 %1262 }
 0x3cd   : > { %1978 = vrcp.f32 %v1263_v1 }
 0x3cf   : > { %v1971_v44 = vpop.eup %1970 }
 0x3d0   : > { %v1269_v22 = vpop.xlane.xlu1 %1268  ;;  %v1378_v25 = vmul.f32 %v1971_v44, %v2733_v61  ;;  %v1377_v56 = vmul.f32 %v1971_v44, %v2729_v21  ;;  %v1973_v41 = vpop.eup %1972 }
 0x3d1   : > { %1980 = vrcp.f32 %v1269_v22  ;;  %v1384_v31 = vmul.f32 %v1973_v41, %v2739_v9  ;;  %v1383_v2 = vmul.f32 %v1973_v41, %v2735_v35 }
 0x3d2   : > { %v1272_v0 = vpop.xlane.xlu0 %1271  ;;  %v1442_v60 = vpack.c.bf16 %v1380_v62, %v1378_v25  ;;  %v1441_v17 = vpack.c.bf16 %v1379_v12, %v1377_v56 }
 0x3d3   : > { %v1975_v50 = vpop.eup %1974  ;;  %1982 = vrcp.f32 %v1272_v0 }
 0x3d4   : > { %1481 = vmatprep.subr.bf16.mxu0 %v1442_v60  ;;  %v1382_v1 = vmul.f32 %v1975_v50, %v2747_v15  ;;  %v1381_v61 = vmul.f32 %v1975_v50, %v2743_v27 }
 0x3d5   : > { %v1977_v3 = vpop.eup %1976  ;;  %1482 = vmatpush1.bf16.msra.mxu0 %v1441_v17 }
 0x3d6   : > { %v1444_v21 = vpack.c.bf16 %v1384_v31, %v1382_v1  ;;  %v1443_v10 = vpack.c.bf16 %v1383_v2, %v1381_v61  ;;  %v1388_v25 = vmul.f32 %v1977_v3, %v2755_v59  ;;  %v1387_v15 = vmul.f32 %v1977_v3, %v2751_v16 }
 0x3d7   : > { %v1979_v44 = vpop.eup %1978  ;;  %v1275_v5 = vpop.xlane.xlu1 %1274 }
 0x3d8   : > { %1483 = vmatprep.subr.bf16.mxu0 %v1444_v21  ;;  %v1386_v62 = vmul.f32 %v1979_v44, %v2759_v8  ;;  %v1385_v22 = vmul.f32 %v1979_v44, %v2749_v28  ;;  %1984 = vrcp.f32 %v1275_v5 }
 0x3d9   : > { %1484 = vmatpush1.bf16.msra.mxu0 %v1443_v10 }
 0x3da   : > { %v1278_v9 = vpop.xlane.xlu0 %1277  ;;  %v1446_v27 = vpack.c.bf16 %v1388_v25, %v1386_v62  ;;  %v1445_v35 = vpack.c.bf16 %v1387_v15, %v1385_v22 }
 0x3db   : > { %v1981_v50 = vpop.eup %1980  ;;  %1986 = vrcp.f32 %v1278_v9 }
 0x3dc   : > { %1485 = vmatprep.subr.bf16.mxu0 %v1446_v27  ;;  %v1390_v41 = vmul.f32 %v1981_v50, %v2769_v4  ;;  %v1389_v56 = vmul.f32 %v1981_v50, %v2767_v13 }
 0x3dd   : > { %v1983_v12 = vpop.eup %1982  ;;  %1486 = vmatpush1.bf16.msra.mxu0 %v1445_v35 }
 0x3de   : > { %v1392_v59 = vmul.f32 %v1983_v12, %v2775_v49  ;;  %v1391_v28 = vmul.f32 %v1983_v12, %v2771_v36 }
 0x3df   : > { %v1281_v8 = vpop.xlane.xlu1 %1280 }
 0x3e0   : > { %v1448_v16 = vpack.c.bf16 %v1392_v59, %v1390_v41  ;;  %v1447_v3 = vpack.c.bf16 %v1391_v28, %v1389_v56  ;;  %1988 = vrcp.f32 %v1281_v8 }
 0x3e2   : > { %1487 = vmatprep.subr.bf16.mxu0 %v1448_v16  ;;  %v1284_v0 = vpop.xlane.xlu0 %1283  ;;  %v1985_v60 = vpop.eup %1984 }
 0x3e3   : > { %1990 = vrcp.f32 %v1284_v0  ;;  %1488 = vmatpush1.bf16.msra.mxu0 %v1447_v3  ;;  %v1394_v4 = vmul.f32 %v1985_v60, %v2785_v20  ;;  %v1393_v1 = vmul.f32 %v1985_v60, %v2783_v39 }
 0x3e5   : > { %v1987_v17 = vpop.eup %1986 }
 0x3e6   : > { %v1396_v13 = vmul.f32 %v1987_v17, %v2793_v33  ;;  %v1395_v49 = vmul.f32 %v1987_v17, %v2787_v24 }
 0x3e7   : > { %v1287_v31 = vpop.xlane.xlu1 %1286 }
 0x3e8   : > { %v1450_v36 = vpack.c.bf16 %v1396_v13, %v1394_v4  ;;  %v1449_v61 = vpack.c.bf16 %v1395_v49, %v1393_v1  ;;  %1992 = vrcp.f32 %v1287_v31 }
 0x3ea   : > { %1489 = vmatprep.subr.bf16.mxu0 %v1450_v36  ;;  %v1290_v2 = vpop.xlane.xlu0 %1289  ;;  %v1989_v21 = vpop.eup %1988 }
 0x3eb   : > { %1994 = vrcp.f32 %v1290_v2  ;;  %1490 = vmatpush1.bf16.msra.mxu0 %v1449_v61  ;;  %v1398_v44 = vmul.f32 %v1989_v21, %v2801_v30  ;;  %v1397_v33 = vmul.f32 %v1989_v21, %v2799_v45 }
 0x3ed   : > { %v1991_v10 = vpop.eup %1990 }
 0x3ee   : > { %v1400_v20 = vmul.f32 %v1991_v10, %v2809_v43  ;;  %v1399_v39 = vmul.f32 %v1991_v10, %v2803_v18 }
 0x3ef   : > { %v1293_v5 = vpop.xlane.xlu1 %1292 }
 0x3f0   : > { %v1452_v24 = vpack.c.bf16 %v1400_v20, %v1398_v44  ;;  %v1451_v62 = vpack.c.bf16 %v1399_v39, %v1397_v33  ;;  %1996 = vrcp.f32 %v1293_v5 }
 0x3f2   : > { %1491 = vmatprep.subr.bf16.mxu0 %v1452_v24  ;;  %v1296_v25 = vpop.xlane.xlu0 %1295  ;;  %v1993_v22 = vpop.eup %1992  ;;  %v3248_v24 = vld [vmem:[#allocation18_spill] sm:$0xff] }
 0x3f3   : > { %1998 = vrcp.f32 %v1296_v25  ;;  %1492 = vmatpush1.bf16.msra.mxu0 %v1451_v62  ;;  %v1402_v9 = vmul.f32 %v1993_v22, %v2817_v11  ;;  %v1401_v43 = vmul.f32 %v1993_v22, %v2815_v51  ;;  %v3249_v25 = vld [vmem:[#allocation19_spill] sm:$0xff]  ;;  %v3250_v22 = vld [vmem:[#allocation17_spill] sm:$0xff] }
 0x3f5   : > { %v1995_v15 = vpop.eup %1994 }
 0x3f6   : > { %v1404_v30 = vmul.f32 %v1995_v15, %v2825_v26  ;;  %v1403_v45 = vmul.f32 %v1995_v15, %v2819_v14  ;;  %v3251_v15 = vld [vmem:[#allocation33_spill] sm:$0xff] }
 0x3f7   : > { %v1299_v27 = vpop.xlane.xlu1 %1298 }
 0x3f8   : > { %v1454_v18 = vpack.c.bf16 %v1404_v30, %v1402_v9  ;;  %v1453_v35 = vpack.c.bf16 %v1403_v45, %v1401_v43  ;;  %2000 = vrcp.f32 %v1299_v27 }
 0x3fa   : > { %1493 = vmatprep.subr.bf16.mxu0 %v1454_v18  ;;  %v1302_v50 = vpop.xlane.xlu0 %1301  ;;  %v1997_v41 = vpop.eup %1996  ;;  %v3252_v18 = vld [vmem:[#allocation21_spill] sm:$0xff] }
 0x3fb   : > { %2002 = vrcp.f32 %v1302_v50  ;;  %1494 = vmatpush1.bf16.msra.mxu0 %v1453_v35  ;;  %v1406_v12 = vmul.f32 %v1997_v41, %v2833_v53  ;;  %v1405_v26 = vmul.f32 %v1997_v41, %v2831_v57  ;;  %v3253_v50 = vld [vmem:[#allocation23_spill] sm:$0xff] }
 0x3fd   : > { %v1999_v56 = vpop.eup %1998 }
 0x3fe   : > { %v1408_v11 = vmul.f32 %v1999_v56, %v2841_v32  ;;  %v1407_v51 = vmul.f32 %v1999_v56, %v2835_v40  ;;  %v3254_v56 = vld [vmem:[#allocation20_spill] sm:$0xff] }
 0x3ff   : > { %v1305_v59 = vpop.xlane.xlu1 %1304 }
 0x400   : > { %v1456_v14 = vpack.c.bf16 %v1408_v11, %v1406_v12  ;;  %v1455_v28 = vpack.c.bf16 %v1407_v51, %v1405_v26  ;;  %2004 = vrcp.f32 %v1305_v59  ;;  %v3255_v11 = vld [vmem:[#allocation22_spill] sm:$0xff] }
 0x402   : > { %1495 = vmatprep.subr.bf16.mxu0 %v1456_v14  ;;  %v1308_v8 = vpop.xlane.xlu0 %1307  ;;  %v2001_v16 = vpop.eup %2000 }
 0x403   : > { %2006 = vrcp.f32 %v1308_v8  ;;  %1496 = vmatpush1.bf16.msra.mxu0 %v1455_v28  ;;  %v1410_v0 = vmul.f32 %v2001_v16, %v2849_v29  ;;  %v1409_v32 = vmul.f32 %v2001_v16, %v2847_v63 }
 0x405   : > { %v2003_v3 = vpop.eup %2002 }
 0x406   : > { %v1412_v53 = vmul.f32 %v2003_v3, %v2857_v47  ;;  %v1411_v57 = vmul.f32 %v2003_v3, %v2851_v46  ;;  %v3256_v3 = vld [vmem:[#allocation25_spill] sm:$0xff] }
 0x407   : > { %v1311_v60 = vpop.xlane.xlu1 %1310 }
 0x408   : > { %v1458_v40 = vpack.c.bf16 %v1412_v53, %v1410_v0  ;;  %v1457_v17 = vpack.c.bf16 %v1411_v57, %v1409_v32  ;;  %2008 = vrcp.f32 %v1311_v60  ;;  %v3257_v32 = vld [vmem:[#allocation24_spill] sm:$0xff] }
 0x40a   : > { %1497 = vmatprep.subr.bf16.mxu0 %v1458_v40  ;;  %v1314_v4 = vpop.xlane.xlu0 %1313  ;;  %v2005_v13 = vpop.eup %2004 }
 0x40b   : > { %2010 = vrcp.f32 %v1314_v4  ;;  %1498 = vmatpush1.bf16.msra.mxu0 %v1457_v17  ;;  %v1414_v49 = vmul.f32 %v2005_v13, %v2865_v19  ;;  %v1413_v47 = vmul.f32 %v2005_v13, %v2863_v6 }
 0x40d   : > { %v2007_v1 = vpop.eup %2006 }
 0x40e   : > { %v1416_v29 = vmul.f32 %v2007_v1, %v2873_v55  ;;  %v1415_v63 = vmul.f32 %v2007_v1, %v2867_v52 }
 0x40f   : > { %v1317_v31 = vpop.xlane.xlu1 %1316 }
 0x410   : > { %v1460_v46 = vpack.c.bf16 %v1416_v29, %v1414_v49  ;;  %v1459_v36 = vpack.c.bf16 %v1415_v63, %v1413_v47  ;;  %2012 = vrcp.f32 %v1317_v31  ;;  %v3258_v31 = vld [vmem:[#allocation28_spill] sm:$0xff] }
 0x412   : > { %1499 = vmatprep.subr.bf16.mxu0 %v1460_v46  ;;  %v1320_v61 = vpop.xlane.xlu0 %1319  ;;  %v2009_v2 = vpop.eup %2008 }
 0x413   : > { %2014 = vrcp.f32 %v1320_v61  ;;  %1500 = vmatpush1.bf16.msra.mxu0 %v1459_v36  ;;  %v1418_v10 = vmul.f32 %v2009_v2, %v2881_v38  ;;  %v1417_v55 = vmul.f32 %v2009_v2, %v2879_v23  ;;  %v3259_v2 = vld [vmem:[#allocation36_spill] sm:$0xff] }
 0x415   : > { %v2011_v21 = vpop.eup %2010 }
 0x416   : > { %v1420_v19 = vmul.f32 %v2011_v21, %v2889_v42  ;;  %v1419_v6 = vmul.f32 %v2011_v21, %v2883_v58 }
 0x417   : > { %v1323_v44 = vpop.xlane.xlu1 %1322 }
 0x418   : > { %v1462_v52 = vpack.c.bf16 %v1420_v19, %v1418_v10  ;;  %v1461_v20 = vpack.c.bf16 %v1419_v6, %v1417_v55  ;;  %2016 = vrcp.f32 %v1323_v44  ;;  %v3260_v10 = vld [vmem:[#allocation37_spill] sm:$0xff]  ;;  %v3261_v55 = vld [vmem:[#allocation38_spill] sm:$0xff]  ;;  %v3262_v44 = vld [vmem:[#allocation39_spill] sm:$0xff] }
 0x41a   : > { %1501 = vmatprep.subr.bf16.mxu0 %v1462_v52  ;;  %v1326_v33 = vpop.xlane.xlu0 %1325  ;;  %v2013_v39 = vpop.eup %2012 }
 0x41b   : > { %2018 = vrcp.f32 %v1326_v33  ;;  %1502 = vmatpush1.bf16.msra.mxu0 %v1461_v20  ;;  %v1422_v62 = vmul.f32 %v2013_v39, %v3248_v24  ;;  %v1421_v42 = vmul.f32 %v2013_v39, %v3250_v22  ;;  %v3263_v39 = vld [vmem:[#allocation34_spill] sm:$0xff]  ;;  %v3266_v22 = vld [vmem:[#allocation27_spill] sm:$0xff] }
 0x41d   : > { %v2015_v5 = vpop.eup %2014 }
 0x41e   : > { %v1424_v38 = vmul.f32 %v2015_v5, %v3249_v25  ;;  %v1423_v23 = vmul.f32 %v2015_v5, %v3251_v15  ;;  %v3264_v5 = vld [vmem:[#allocation35_spill] sm:$0xff]  ;;  %v3265_v25 = vld [vmem:[#allocation26_spill] sm:$0xff] }
 0x41f   : > { %v1329_v9 = vpop.xlane.xlu1 %1328  ;;  %v3267_v15 = vld [vmem:[#allocation30_spill] sm:$0xff] }
 0x420   : > { %v1464_v58 = vpack.c.bf16 %v1424_v38, %v1422_v62  ;;  %v1463_v30 = vpack.c.bf16 %v1423_v23, %v1421_v42  ;;  %2020 = vrcp.f32 %v1329_v9  ;;  %v3268_v9 = vld [vmem:[#allocation32_spill] sm:$0xff] }
 0x422   : > { %1503 = vmatprep.subr.bf16.mxu0 %v1464_v58  ;;  %v1332_v43 = vpop.xlane.xlu0 %1331  ;;  %v2017_v45 = vpop.eup %2016 }
 0x423   : > { %2022 = vrcp.f32 %v1332_v43  ;;  %1504 = vmatpush1.bf16.msra.mxu0 %v1463_v30  ;;  %v1426_v35 = vmul.f32 %v2017_v45, %v3252_v18  ;;  %v1425_v12 = vmul.f32 %v2017_v45, %v3254_v56  ;;  %v3269_v30 = vld [vmem:[#allocation29_spill] sm:$0xff]  ;;  %v3270_v45 = vld [vmem:[#allocation31_spill] sm:$0xff] }
 0x424   : > { %v1571_v56 = vld [vmem:[%s2416_s8] sm:$0xff] }
 0x425   : > { %v2019_v27 = vpop.eup %2018 }
 0x426   : > { %v1428_v41 = vmul.f32 %v2019_v27, %v3253_v50  ;;  %v1427_v26 = vmul.f32 %v2019_v27, %v3255_v11  ;;  %v1562_v50 = vstv %s1553_s0 }
 0x427   : > { %v1335_v51 = vpop.xlane.xlu1 %1334 }
 0x428   : > { %2024 = vrcp.f32 %v1335_v51  ;;  %v1466_v59 = vpack.c.bf16 %v1428_v41, %v1426_v35  ;;  %v1465_v14 = vpack.c.bf16 %v1427_v26, %v1425_v12  ;;  %v1572_v26 = vld [vmem:[%s2416_s8 + $0x8] sm:$0xff] }
 0x429   : > { %v1338_v28 = vpop.xlane.xlu0 %1337 }
 0x42a   : > { %1505 = vmatprep.subr.bf16.mxu0 %v1466_v59  ;;  %2026 = vrcp.f32 %v1338_v28  ;;  %v2021_v8 = vpop.eup %2020 }
 0x42b   : > { %1506 = vmatpush1.bf16.msra.mxu0 %v1465_v14  ;;  %v1430_v0 = vmul.f32 %v2021_v8, %v3256_v3  ;;  %v1429_v57 = vmul.f32 %v2021_v8, %v3257_v32  ;;  %v1573_v14 = vld [vmem:[%s2416_s8 + $0x10] sm:$0xff]  ;;  %v1574_v3 = vld [vmem:[%s2416_s8 + $0x18] sm:$0xff] }
 0x42d   : > { %v2023_v16 = vpop.eup %2022 }
 0x42e   : > { %v1432_v53 = vmul.f32 %v2023_v16, %v2937_v37  ;;  %v1431_v60 = vmul.f32 %v2023_v16, %v2931_v7 }
 0x42f   : > { %v1341_v40 = vpop.xlane.xlu1 %1340 }
 0x430   : > { %2028 = vrcp.f32 %v1341_v40  ;;  %v1468_v17 = vpack.c.bf16 %v1432_v53, %v1430_v0  ;;  %v1467_v4 = vpack.c.bf16 %v1431_v60, %v1429_v57  ;;  %v1575_v40 = vld [vmem:[%s2416_s8 + $0x20] sm:$0xff] }
 0x431   : > { %v1344_v13 = vpop.xlane.xlu0 %1343 }
 0x432   : > { %v2025_v1 = vpop.eup %2024  ;;  %1507 = vmatprep.subr.bf16.mxu0 %v1468_v17  ;;  %2030 = vrcp.f32 %v1344_v13  ;;  %v1576_v13 = vld [vmem:[%s2416_s8 + $0x28] sm:$0xff] }
 0x433   : > { %1508 = vmatpush1.bf16.msra.mxu0 %v1467_v4  ;;  %v605_v49 = vpop.permute.xlu1 %604  ;;  %v1434_v47 = vmul.f32 %v2025_v1, %v2951_v34  ;;  %v1433_v37 = vmul.f32 %v2025_v1, %v2949_v48 }
 0x434   : > { %v2027_v29 = vpop.eup %2026  ;;  %v673_v21 = vadd.f32 %v3259_v2, %v605_v49  ;;  %v675_v19 = vadd.f32 %v3260_v10, %v605_v49 }
 0x435   : > { %v1436_v63 = vmul.f32 %v2027_v29, %v2957_v54  ;;  %v1435_v46 = vmul.f32 %v2027_v29, %v3258_v31  ;;  %v1577_v29 = vld [vmem:[%s2416_s8 + $0x30] sm:$0xff]  ;;  %v1578_v31 = vld [vmem:[%s2416_s8 + $0x38] sm:$0xff]  ;;  %s2092_s8 = scalar_lea.vmem %s3076_s22, 1024 }
 0x436   : > { %p2093_p0 = scmp.ne.s32.totalorder %s3076_s22, %s2092_s8  ;;  %p2100_p10 = scmp.lt.s32.totalorder %s2098_s24, %s2092_s8 }
 0x437   : > { %v610_v7 = vpop.permute.xlu1 %609  ;;  %v1470_v36 = vpack.c.bf16 %v1436_v63, %v1434_v47  ;;  %v1469_v61 = vpack.c.bf16 %v1435_v46, %v1433_v37 }
 0x438   : > { %v677_v6 = vadd.f32 %v3261_v55, %v610_v7  ;;  %v679_v52 = vadd.f32 %v3262_v44, %v610_v7  ;;  %p2094_p12 = pnand %p2093_p0, %p3271_p3  ;;  %p2101_p9 = por %p2100_p10, %p2099_p7 }
 0x439   : > { %1509 = vmatprep.subr.bf16.mxu0 %v1470_v36  ;;  %v600_v20 = vpop.permute.xlu0 %599 }
 0x43a   : > { %v2029_v34 = vpop.eup %2028  ;;  %v683_v33 = vpack.c.bf16 %v677_v6, %v673_v21  ;;  %v684_v54 = vpack.c.bf16 %v679_v52, %v675_v19  ;;  %v667_v48 = vadd.f32 %v3263_v39, %v600_v20  ;;  %v669_v24 = vadd.f32 %v3264_v5, %v600_v20  ;;  %1510 = vmatpush1.bf16.msra.mxu0 %v1469_v61  ;;  %p2095_p13 = pneg %p2094_p12 }
 0x43b   : > { %v1438_v23 = vmul.f32 %v2029_v34, %v3267_v15  ;;  %v1437_v43 = vmul.f32 %v2029_v34, %v3269_v30 }
 0x43c   : > { %v2031_v62 = vpop.eup %2030  ;;  %v681_v38 = vpack.c.bf16 %v667_v48, %v3265_v25  ;;  %v682_v42 = vpack.c.bf16 %v669_v24, %v3266_v22  ;;  %p2102_p11 = pnand %p2101_p9, %p2095_p13 }
 0x43d   : > { %v1440_v58 = vmul.f32 %v2031_v62, %v3268_v9  ;;  %v1439_v27 = vmul.f32 %v2031_v62, %v3270_v45 }
 0x43e   : > { %1513 = vmatprep.mubr.bf16.mxu0 %v682_v42 }
 0x43f   : > { %v1472_v18 = vpack.c.bf16 %v1440_v58, %v1438_v23  ;;  %v1471_v35 = vpack.c.bf16 %v1439_v27, %v1437_v43 }
 0x441   : > { %1511 = vmatprep.subr.bf16.mxu0 %v1472_v18 }
 0x442   : > { %1512 = vmatpush1.bf16.msra.mxu0 %v1471_v35 }
 0x445   : > { %1514 = vmatmul.mubr.bf16.vlgmr.msra.gmra.mrb[16].mxu0 %v681_v38 }
 0x446   : > { %1523 = vmatprep.mubr.bf16.mxu0 %v684_v54 }
 0x44d   : > { %1524 = vmatmul.mubr.bf16.gmra.mrb[20].mxu0 %v683_v33 }
 0x518   : > { %v1515_v41 = vpop.f32.mrb[16].mxu0 }
 0x519   : > { %v1563_v12 = vmul.f32 %v1562_v50, %v1515_v41  ;;  %v1517_v11 = vpop.f32.mrb[17].mxu0 }
 0x51a   : > { %v1564_v51 = vmul.f32 %v1562_v50, %v1517_v11  ;;  %v1519_v59 = vpop.f32.mrb[18].mxu0 }
 0x51b   : > { %v1579_v28 = vadd.f32 %v1571_v56, %v1563_v12  ;;  %v1565_v8 = vmul.f32 %v1562_v50, %v1519_v59  ;;  %v1521_v16 = vpop.f32.mrb[19].mxu0 }
 0x51c   : > { %v1580_v0 = vadd.f32 %v1572_v26, %v1564_v51  ;;  %v1566_v53 = vmul.f32 %v1562_v50, %v1521_v16 }
 0x51d   : > { %1587 = vst [vmem:[%s407_s13] sm:$0xff] %v1579_v28  ;;  %v1581_v32 = vadd.f32 %v1573_v14, %v1565_v8 }
 0x51e   : > { %1588 = vst [vmem:[%s407_s13 + $0x8] sm:$0xff] %v1580_v0  ;;  %v1582_v57 = vadd.f32 %v1574_v3, %v1566_v53 }
 0x51f   : > { %1589 = vst [vmem:[%s407_s13 + $0x10] sm:$0xff] %v1581_v32 }
 0x520   : > { %1590 = vst [vmem:[%s407_s13 + $0x18] sm:$0xff] %v1582_v57  ;;  %v1525_v60 = vpop.f32.mrb[20].mxu0 }
 0x521   : > { %v1567_v17 = vmul.f32 %v1562_v50, %v1525_v60  ;;  %v1527_v4 = vpop.f32.mrb[21].mxu0 }
 0x522   : > { %v1568_v1 = vmul.f32 %v1562_v50, %v1527_v4  ;;  %v1529_v49 = vpop.f32.mrb[22].mxu0 }
 0x523   : > { %v1583_v47 = vadd.f32 %v1575_v40, %v1567_v17  ;;  %v1569_v63 = vmul.f32 %v1562_v50, %v1529_v49  ;;  %v1531_v37 = vpop.f32.mrb[23].mxu0 }
 0x524   : > { %v1584_v46 = vadd.f32 %v1576_v13, %v1568_v1  ;;  %v1570_v7 = vmul.f32 %v1562_v50, %v1531_v37 }
 0x525   : > { %1591 = vst [vmem:[%s407_s13 + $0x20] sm:$0xff] %v1583_v47  ;;  %v1585_v36 = vadd.f32 %v1577_v29, %v1569_v63 }
 0x526   : > { %1592 = vst [vmem:[%s407_s13 + $0x28] sm:$0xff] %v1584_v46  ;;  %v1586_v61 = vadd.f32 %v1578_v31, %v1570_v7 }
 0x527   : > { %1593 = vst [vmem:[%s407_s13 + $0x30] sm:$0xff] %v1585_v36 }
 0x528   : > { %1594 = vst [vmem:[%s407_s13 + $0x38] sm:$0xff] %v1586_v61 }
 0x529   : > { %2105 = shalt.err (!%p2102_p11)
}
 0x52a   : > { %s2106_s21 = scalar_lea.hbm %s3081_s27, 1024  ;;  %s2110_s19 = scalar_lea.hbm %s3139_s9, 2048 }
 0x52b   : > { %p2107_p1 = scmp.ne.s32.totalorder %s3081_s27, %s2106_s21  ;;  %p2111_p5 = scmp.lt.u32.totalorder %s3081_s27, %s3139_s9 }
 0x52c   : > { %p2112_p4 = scmp.lt.u32.totalorder %s2110_s19, %s2106_s21  ;;  %p2114_p0 = scmp.lt.u32.totalorder %s2106_s21, %s3081_s27 }
 0x52d   : > { %p2108_p6 = pnand %p2107_p1, %p3271_p3 }
 0x52e   : > { %p2113_p8 = por %p2112_p4, %p2111_p5 }
 0x52f   : > { %p2109_p2 = pneg %p2108_p6 }
 0x530   : > { %p2115_p12 = por %p2114_p0, %p2113_p8 }
 0x532   : > { %p2116_p13 = pnand %p2115_p12, %p2109_p2 }
 0x534   : > { %2119 = shalt.err (!%p2116_p13)
}
 0x535   : > { %s2186_s26 = smov 256   ;;  %s2187_s30 = smov 16  }
 0x536   : > { %1766 = dma.vmem_to_hbm [thread:$0]  (%p3271_p3), %s3076_s22, 1024, %s3081_s27, %s1596_s14, %s2186_s26, %s2186_s26, %s2187_s30  }
 0x537 PF: > { %s1624_s29 = sand.u32 1, %s2158_s11   ;;  %p3272_p7 = scmp.ne.s32.totalorder %s3183_s25, 0 }
 0x538   : > { %p3273_p10 = scmp.ge.s32.totalorder %s2178_s16, 2  ;;  %s1625_s8 = scalar_lea.sflag [#allocation7], %s1624_s29 }
 0x53a   : > { %p1776_p9 = pnand %p3273_p10, %p3272_p7 }
 0x53c   : > { %2153 = dma.done.wait (!%p1776_p9), %s1625_s8, 1024  }
 0x53d   : > { %2155 = vsyncadd (!%p1776_p9), %s1625_s8, 4294966272  ;;  %s29_s16 = sadd.s32 1, %s2178_s16   ;;  %s3274_s10 = sld [smem:[#allocation14_spill]] }
 0x53e   : > { %p26_p11 = scmp.ge.s32.totalorder %s29_s16, 4   ;;  %s3275_s13 = sld [smem:[#allocation16_spill]] }
 0x53f   : > { %s3276_s23 = sld [smem:[#allocation15_spill]]  ;;  %s3277_s11 = smov %s2162_s12 }
 0x540   : > { %s3279_s14 = smov %s2174_s15  ;;  %28 = sbr.rel (!%p26_p11) target bundleno = 11 (0xb), region = 122 }
 0x543   : > { %s3278_s12 = smov %s3274_s10 }
 0x545   : > { %s3280_s15 = smov %s3276_s23 }
 0x547   :  { %1630 = vsyncpa [#allocation6], 1 }
 0x548   :  { %1632 = vsyncpa [#allocation6 + $0x1], 1 }
 0x549   :  { %1633 = vsyncpa [#allocation9], 1 }
 0x54a   :  { %1635 = vsyncpa [#allocation9 + $0x1], 1 }
 0x54b   :  { %1636 = vsyncpa [#allocation7], 1 }
 0x54c   :  { %1638 = vsyncpa [#allocation7 + $0x1], 1 }

</bundles_post_ra>
